<compile_context>
chip_gen: v6e
topology: v6e:2x2x1
jax: 0.10.0
libtpu: 0.0.40
codegen_flags: <defaults>
</compile_context>

<pallas_src>
import math

import jax
import jax.numpy as jnp
import numpy as np
from jax.experimental import pallas as pl
from jax.experimental.pallas import tpu as pltpu

# ---- model sizes -----------------------------------------------------------
B = 256                    # batch (stacked samples / ensemble members)
C, H_IMG, W_IMG = 1, 16, 16
D = C * H_IMG * W_IMG      # 256 flattened features (lane-dense)
HID = 64                   # logical hidden width of encoder / decoder MLPs
HID_PAD = 128              # zero-padded hidden width (lane-dense, MXU friendly)
M = 8                      # latent dim

LOG2PI = math.log(2.0 * math.pi)


def _device_kind() -> str:
    try:
        return jax.devices()[0].device_kind.lower()
    except Exception:  # pragma: no cover - defensive
        return ""


_KIND = _device_kind()
_IS_V7 = ("v7" in _KIND) or ("7x" in _KIND)      # 2 TensorCores per chip
_IS_V6 = "v6" in _KIND

# Grid steps = number of TensorCores we can shard over.  On single-TC chips a
# second grid step is pure per-step overhead for this tiny kernel.
NB = 2 if _IS_V7 else 1
TB = B // NB

# bf16 MXU operands on v6e/v7x (native MXU rate, halves weight HBM bytes);
# f32 elsewhere for exact parity with the reference.
MM_DTYPE = jnp.bfloat16 if (_IS_V6 or _IS_V7) else jnp.float32


# ---- kernel ----------------------------------------------------------------
def _vae_neg_elbo_kernel(x_ref, eps_ref,
                         we1_ref, be1_ref, we2_ref, be2_ref,
                         wd1_ref, bd1_ref, wd2_ref, bd2_ref,
                         out_ref):
    eps = eps_ref[...]                                       # (TB, M) f32

    # ---- encoder MLP: q(z|x) = N(mu, exp(logstd)) --------------------------
    x_mm = x_ref[...].astype(MM_DTYPE)                       # matmul operand only
    h = jnp.dot(x_mm, we1_ref[...],
                preferred_element_type=jnp.float32) + be1_ref[...]
    h = jnp.maximum(h, 0.0)                                  # (TB, HID_PAD)
    enc = jnp.dot(h.astype(MM_DTYPE), we2_ref[...],
                  preferred_element_type=jnp.float32) + be2_ref[...]   # (TB, 2M)
    mu = enc[:, :M]
    logstd = enc[:, M:]

    # ---- reparameterized sample z = mu + exp(logstd) * eps (f32) -----------
    z = mu + jnp.exp(logstd) * eps                           # (TB, M)

    # ---- decoder MLP: p(x|z) = N(xhat, 1) -----------------------------------
    hd = jnp.dot(z.astype(MM_DTYPE), wd1_ref[...],
                 preferred_element_type=jnp.float32) + bd1_ref[...]
    hd = jnp.maximum(hd, 0.0)                                # (TB, HID_PAD)
    xhat = jnp.dot(hd.astype(MM_DTYPE), wd2_ref[...],
                   preferred_element_type=jnp.float32) + bd2_ref[...]  # (TB, D)

    # ---- ELBO for this block ------------------------------------------------
    # Re-load x (f32) only here so its vregs are not live across the matmuls.
    diff = x_ref[...] - xhat
    # sum_b [ log p(x|z) - log q(z|x) + log p(z) ]
    # = -0.5*sum(diff^2) + sum(0.5*(eps^2 - z^2) + logstd) - 0.5*D*log(2*pi)*TB
    #   (the M-dim log(2*pi) terms cancel; one big + one small reduction)
    small = jnp.sum(0.5 * (eps * eps - z * z) + logstd)
    block_elbo = (-0.5 * jnp.sum(diff * diff)
                  + small
                  - 0.5 * D * LOG2PI * TB)
    # Fold the final -mean into the kernel: each block writes its share of
    # the negative ELBO so no trailing XLA reduce/scale is needed for NB == 1.
    out_ref[0, 0] = block_elbo * (-1.0 / B)                  # scalar SMEM store


def _resident_spec(shape):
    """Full-array VMEM block with a constant index map (stays resident)."""
    zero = (0,) * len(shape)
    return pl.BlockSpec(shape, lambda i, _z=zero: _z)


def vae_forward(x_nchw, eps, padded):
    """Negative ELBO.  x_nchw: (B, C, H, W) f32; eps: (B, M) f32."""
    x_flat = x_nchw.reshape(B, D).astype(jnp.float32)
    weights = (padded["we1"], padded["be1"],
               padded["we2"], padded["be2"],
               padded["wd1"], padded["bd1"],
               padded["wd2"], padded["bd2"])

    in_specs = ([pl.BlockSpec((TB, D), lambda i: (i, 0)),
                 pl.BlockSpec((TB, M), lambda i: (i, 0))]
                + [_resident_spec(w.shape) for w in weights])

    partial = pl.pallas_call(
        _vae_neg_elbo_kernel,
        out_shape=jax.ShapeDtypeStruct((NB, 1), jnp.float32),
        grid=(NB,),
        in_specs=in_specs,
        out_specs=pl.BlockSpec((1, 1), lambda i: (i, 0),
                               memory_space=pltpu.MemorySpace.SMEM),
        compiler_params=pltpu.CompilerParams(
            dimension_semantics=("parallel",)),
    )(x_flat, eps, *weights)

    if NB == 1:
        return partial[0, 0]            # no trailing reduction
    return jnp.sum(partial)             # combine the per-TensorCore blocks


vae_forward_jit = jax.jit(vae_forward)


# ---- pure-JAX reference (unpadded logical f32 weights) ----------------------
def vae_forward_ref(x_nchw, eps, params):
    x = x_nchw.reshape(B, D).astype(jnp.float32)
    h = jnp.maximum(x @ params["we1"] + params["be1"], 0.0)
    enc = h @ params["we2"] + params["be2"]
    mu, logstd = enc[:, :M], enc[:, M:]
    std = jnp.exp(logstd)
    z = mu + std * eps
    hd = jnp.maximum(z @ params["wd1"] + params["bd1"], 0.0)
    xhat = hd @ params["wd2"] + params["bd2"]
    log_px = jnp.sum(-0.5 * (x - xhat) ** 2 - 0.5 * LOG2PI, axis=-1)
    log_qz = jnp.sum(-0.5 * eps ** 2 - logstd - 0.5 * LOG2PI, axis=-1)
    log_pz = jnp.sum(-0.5 * z ** 2 - 0.5 * LOG2PI, axis=-1)
    return -jnp.mean(log_px - log_qz + log_pz)


def init_params(key):
    ks = jax.random.split(key, 4)
    scale = 0.05
    return {
        "we1": scale * jax.random.normal(ks[0], (D, HID), jnp.float32),
        "be1": jnp.zeros((1, HID), jnp.float32),
        "we2": scale * jax.random.normal(ks[1], (HID, 2 * M), jnp.float32),
        "be2": jnp.zeros((1, 2 * M), jnp.float32),
        "wd1": scale * jax.random.normal(ks[2], (M, HID), jnp.float32),
        "bd1": jnp.zeros((1, HID), jnp.float32),
        "wd2": scale * jax.random.normal(ks[3], (HID, D), jnp.float32),
        "bd2": jnp.zeros((1, D), jnp.float32),
    }


def pad_params(p):
    """Zero-pad hidden dim 64->128 (exact) and store matmul weights in MM_DTYPE.

    Padded we1/wd1 columns and be1/bd1 entries are zero so padded activations
    are ReLU(0)=0, and the corresponding padded rows of we2/wd2 are zero, so
    they contribute nothing.  Biases stay f32 (added after the f32-accumulated
    dots).
    """
    pad_h = HID_PAD - HID
    wdt = MM_DTYPE
    return {
        "we1": jnp.pad(p["we1"], ((0, 0), (0, pad_h))).astype(wdt),   # (D, 128)
        "be1": jnp.pad(p["be1"], ((0, 0), (0, pad_h))),               # (1, 128)
        "we2": jnp.pad(p["we2"], ((0, pad_h), (0, 0))).astype(wdt),   # (128, 2M)
        "be2": p["be2"],                                              # (1, 2M)
        "wd1": jnp.pad(p["wd1"], ((0, 0), (0, pad_h))).astype(wdt),   # (M, 128)
        "bd1": jnp.pad(p["bd1"], ((0, 0), (0, pad_h))),               # (1, 128)
        "wd2": jnp.pad(p["wd2"], ((0, pad_h), (0, 0))).astype(wdt),   # (128, D)
        "bd2": p["bd2"],                                              # (1, D)
    }


if __name__ == "__main__":
    key = jax.random.PRNGKey(0)
    k_x, k_eps, k_p = jax.random.split(key, 3)

    x = jax.random.uniform(k_x, (B, C, H_IMG, W_IMG), jnp.float32)
    # q.rsample() noise: drawn once, deterministically, and fed to the kernel
    # TODO(synk): torch.distributions RNG has no in-kernel equivalent; eps is
    # precomputed and passed in (pltpu.prng_* could generate it on-chip).
    eps = jax.random.normal(k_eps, (B, M), jnp.float32)
    params = init_params(k_p)
    padded = pad_params(params)

    neg_elbo = jax.block_until_ready(vae_forward_jit(x, eps, padded))
    neg_elbo_ref = jax.block_until_ready(vae_forward_ref(x, eps, params))

    if MM_DTYPE == jnp.float32:
        rtol, atol = 1e-4, 1e-3        # exact f32 math path
    else:
        rtol, atol = 2e-2, 5e-1        # bf16 MXU operands on v6e/v7x

    assert np.isfinite(float(neg_elbo))
    assert np.allclose(float(neg_elbo), float(neg_elbo_ref), rtol=rtol, atol=atol), (
        float(neg_elbo), float(neg_elbo_ref))
    print("KERNEL_OK")
</pallas_src>

<mosaic_0001>
module attributes {stable_mosaic.version = 11 : i64} {
  func.func @_vae_neg_elbo_kernel(%arg0: i32, %arg1: memref<256x256xf32, #tpu.memory_space<vmem>>, %arg2: memref<256x8xf32, #tpu.memory_space<vmem>>, %arg3: memref<256x128xf32, #tpu.memory_space<vmem>>, %arg4: memref<1x128xf32, #tpu.memory_space<vmem>>, %arg5: memref<128x16xf32, #tpu.memory_space<vmem>>, %arg6: memref<1x16xf32, #tpu.memory_space<vmem>>, %arg7: memref<8x128xf32, #tpu.memory_space<vmem>>, %arg8: memref<1x128xf32, #tpu.memory_space<vmem>>, %arg9: memref<128x256xf32, #tpu.memory_space<vmem>>, %arg10: memref<1x256xf32, #tpu.memory_space<vmem>>, %arg11: memref<1x1xf32, #tpu.memory_space<smem>>) attributes {dimension_semantics = [#tpu.dimension_semantics<parallel>], iteration_bounds = array<i64: 1>, scalar_prefetch = 0 : i64, scratch_operands = 0 : i64, tpu.core_type = #tpu.core_type<tc>, window_params = [{transform_indices = @transform_0, window_bounds = array<i64: 256, 256>}, {transform_indices = @transform_1, window_bounds = array<i64: 256, 8>}, {pipeline_mode = #tpu.pipeline_mode<synchronous>, transform_indices = @transform_2, window_bounds = array<i64: 256, 128>}, {pipeline_mode = #tpu.pipeline_mode<synchronous>, transform_indices = @transform_3, window_bounds = array<i64: 1, 128>}, {pipeline_mode = #tpu.pipeline_mode<synchronous>, transform_indices = @transform_4, window_bounds = array<i64: 128, 16>}, {pipeline_mode = #tpu.pipeline_mode<synchronous>, transform_indices = @transform_5, window_bounds = array<i64: 1, 16>}, {pipeline_mode = #tpu.pipeline_mode<synchronous>, transform_indices = @transform_6, window_bounds = array<i64: 8, 128>}, {pipeline_mode = #tpu.pipeline_mode<synchronous>, transform_indices = @transform_7, window_bounds = array<i64: 1, 128>}, {pipeline_mode = #tpu.pipeline_mode<synchronous>, transform_indices = @transform_8, window_bounds = array<i64: 128, 256>}, {pipeline_mode = #tpu.pipeline_mode<synchronous>, transform_indices = @transform_9, window_bounds = array<i64: 1, 256>}, {transform_indices = @transform_10, window_bounds = array<i64: 1, 1>}]} {
    %c0 = arith.constant 0 : index
    %c0_0 = arith.constant 0 : index
    %0 = vector.load %arg2[%c0, %c0_0] : memref<256x8xf32, #tpu.memory_space<vmem>>, vector<256x8xf32>
    %c0_1 = arith.constant 0 : index
    %c0_2 = arith.constant 0 : index
    %1 = vector.load %arg1[%c0_1, %c0_2] : memref<256x256xf32, #tpu.memory_space<vmem>>, vector<256x256xf32>
    %c0_3 = arith.constant 0 : index
    %c0_4 = arith.constant 0 : index
    %2 = vector.load %arg3[%c0_3, %c0_4] : memref<256x128xf32, #tpu.memory_space<vmem>>, vector<256x128xf32>
    %cst = arith.constant dense<0.000000e+00> : vector<256x128xf32>
    %3 = tpu.matmul %1, %2, %cst {dimension_numbers = #tpu.dot_dimension_numbers<[1], [0], [0], [1], [0, 0, 1, 1], [], []>} : vector<256x256xf32>, vector<256x128xf32>, vector<256x128xf32> -> vector<256x128xf32>
    %c0_5 = arith.constant 0 : index
    %c0_6 = arith.constant 0 : index
    %4 = vector.load %arg4[%c0_5, %c0_6] : memref<1x128xf32, #tpu.memory_space<vmem>>, vector<1x128xf32>
    %5 = vector.broadcast %4 : vector<1x128xf32> to vector<256x128xf32>
    %6 = arith.addf %3, %5 : vector<256x128xf32>
    %cst_7 = arith.constant 0.000000e+00 : f32
    %7 = vector.broadcast %cst_7 : f32 to vector<256x128xf32>
    %8 = arith.maximumf %6, %7 : vector<256x128xf32>
    %c0_8 = arith.constant 0 : index
    %c0_9 = arith.constant 0 : index
    %9 = vector.load %arg5[%c0_8, %c0_9] : memref<128x16xf32, #tpu.memory_space<vmem>>, vector<128x16xf32>
    %cst_10 = arith.constant dense<0.000000e+00> : vector<256x16xf32>
    %10 = tpu.matmul %8, %9, %cst_10 {dimension_numbers = #tpu.dot_dimension_numbers<[1], [0], [0], [1], [0, 0, 1, 1], [], []>} : vector<256x128xf32>, vector<128x16xf32>, vector<256x16xf32> -> vector<256x16xf32>
    %c0_11 = arith.constant 0 : index
    %c0_12 = arith.constant 0 : index
    %11 = vector.load %arg6[%c0_11, %c0_12] : memref<1x16xf32, #tpu.memory_space<vmem>>, vector<1x16xf32>
    %12 = vector.broadcast %11 : vector<1x16xf32> to vector<256x16xf32>
    %13 = arith.addf %10, %12 : vector<256x16xf32>
    %14 = vector.extract_strided_slice %13 {offsets = [0, 0], sizes = [256, 8], strides = [1, 1]} : vector<256x16xf32> to vector<256x8xf32>
    %15 = vector.extract_strided_slice %13 {offsets = [0, 8], sizes = [256, 8], strides = [1, 1]} : vector<256x16xf32> to vector<256x8xf32>
    %16 = math.exp %15 : vector<256x8xf32>
    %17 = arith.mulf %16, %0 : vector<256x8xf32>
    %18 = arith.addf %14, %17 : vector<256x8xf32>
    %c0_13 = arith.constant 0 : index
    %c0_14 = arith.constant 0 : index
    %19 = vector.load %arg7[%c0_13, %c0_14] : memref<8x128xf32, #tpu.memory_space<vmem>>, vector<8x128xf32>
    %cst_15 = arith.constant dense<0.000000e+00> : vector<256x128xf32>
    %20 = tpu.matmul %18, %19, %cst_15 {dimension_numbers = #tpu.dot_dimension_numbers<[1], [0], [0], [1], [0, 0, 1, 1], [], []>} : vector<256x8xf32>, vector<8x128xf32>, vector<256x128xf32> -> vector<256x128xf32>
    %c0_16 = arith.constant 0 : index
    %c0_17 = arith.constant 0 : index
    %21 = vector.load %arg8[%c0_16, %c0_17] : memref<1x128xf32, #tpu.memory_space<vmem>>, vector<1x128xf32>
    %22 = vector.broadcast %21 : vector<1x128xf32> to vector<256x128xf32>
    %23 = arith.addf %20, %22 : vector<256x128xf32>
    %cst_18 = arith.constant 0.000000e+00 : f32
    %24 = vector.broadcast %cst_18 : f32 to vector<256x128xf32>
    %25 = arith.maximumf %23, %24 : vector<256x128xf32>
    %c0_19 = arith.constant 0 : index
    %c0_20 = arith.constant 0 : index
    %26 = vector.load %arg9[%c0_19, %c0_20] : memref<128x256xf32, #tpu.memory_space<vmem>>, vector<128x256xf32>
    %cst_21 = arith.constant dense<0.000000e+00> : vector<256x256xf32>
    %27 = tpu.matmul %25, %26, %cst_21 {dimension_numbers = #tpu.dot_dimension_numbers<[1], [0], [0], [1], [0, 0, 1, 1], [], []>} : vector<256x128xf32>, vector<128x256xf32>, vector<256x256xf32> -> vector<256x256xf32>
    %c0_22 = arith.constant 0 : index
    %c0_23 = arith.constant 0 : index
    %28 = vector.load %arg10[%c0_22, %c0_23] : memref<1x256xf32, #tpu.memory_space<vmem>>, vector<1x256xf32>
    %29 = vector.broadcast %28 : vector<1x256xf32> to vector<256x256xf32>
    %30 = arith.addf %27, %29 : vector<256x256xf32>
    %c0_24 = arith.constant 0 : index
    %c0_25 = arith.constant 0 : index
    %31 = vector.load %arg1[%c0_24, %c0_25] : memref<256x256xf32, #tpu.memory_space<vmem>>, vector<256x256xf32>
    %32 = arith.subf %31, %30 : vector<256x256xf32>
    %33 = arith.mulf %0, %0 : vector<256x8xf32>
    %34 = arith.mulf %18, %18 : vector<256x8xf32>
    %35 = arith.subf %33, %34 : vector<256x8xf32>
    %cst_26 = arith.constant 5.000000e-01 : f32
    %36 = vector.broadcast %cst_26 : f32 to vector<256x8xf32>
    %37 = arith.mulf %36, %35 : vector<256x8xf32>
    %38 = arith.addf %37, %15 : vector<256x8xf32>
    %39 = vector.shape_cast %38 : vector<256x8xf32> to vector<1x256x8xf32>
    %cst_27 = arith.constant dense<0.000000e+00> : vector<1xf32>
    %40 = vector.multi_reduction <add>, %39, %cst_27 [1, 2] : vector<1x256x8xf32> to vector<1xf32>
    %41 = vector.shape_cast %40 : vector<1xf32> to vector<1x1x1xf32>
    %42 = vector.extract %41[0, 0, 0] : f32 from vector<1x1x1xf32>
    %43 = arith.mulf %32, %32 : vector<256x256xf32>
    %44 = vector.shape_cast %43 : vector<256x256xf32> to vector<1x256x256xf32>
    %cst_28 = arith.constant dense<0.000000e+00> : vector<1xf32>
    %45 = vector.multi_reduction <add>, %44, %cst_28 [1, 2] : vector<1x256x256xf32> to vector<1xf32>
    %46 = vector.shape_cast %45 : vector<1xf32> to vector<1x1x1xf32>
    %47 = vector.extract %46[0, 0, 0] : f32 from vector<1x1x1xf32>
    %cst_29 = arith.constant -5.000000e-01 : f32
    %48 = arith.mulf %cst_29, %47 : f32
    %49 = arith.addf %48, %42 : f32
    %cst_30 = arith.constant 60223.5546 : f32
    %50 = arith.subf %49, %cst_30 : f32
    %cst_31 = arith.constant -3.906250e-03 : f32
    %51 = arith.mulf %50, %cst_31 : f32
    %c0_32 = arith.constant 0 : index
    %c0_33 = arith.constant 0 : index
    %52 = memref.load %arg11[%c0_32, %c0_33] : memref<1x1xf32, #tpu.memory_space<smem>>
    memref.store %51, %arg11[%c0_32, %c0_33] : memref<1x1xf32, #tpu.memory_space<smem>>
    return
  }
  func.func @transform_0(%arg0: i32) -> (i32, i32) {
    %c0_i32 = arith.constant 0 : i32
    %c0_i32_0 = arith.constant 0 : i32
    return %arg0, %c0_i32 : i32, i32
  }
  func.func @transform_1(%arg0: i32) -> (i32, i32) {
    %c0_i32 = arith.constant 0 : i32
    %c0_i32_0 = arith.constant 0 : i32
    return %arg0, %c0_i32 : i32, i32
  }
  func.func @transform_2(%arg0: i32) -> (i32, i32) {
    %c0_i32 = arith.constant 0 : i32
    %c0_i32_0 = arith.constant 0 : i32
    %c0_i32_1 = arith.constant 0 : i32
    return %c0_i32, %c0_i32_0 : i32, i32
  }
  func.func @transform_3(%arg0: i32) -> (i32, i32) {
    %c0_i32 = arith.constant 0 : i32
    %c0_i32_0 = arith.constant 0 : i32
    %c0_i32_1 = arith.constant 0 : i32
    return %c0_i32, %c0_i32_0 : i32, i32
  }
  func.func @transform_4(%arg0: i32) -> (i32, i32) {
    %c0_i32 = arith.constant 0 : i32
    %c0_i32_0 = arith.constant 0 : i32
    %c0_i32_1 = arith.constant 0 : i32
    return %c0_i32, %c0_i32_0 : i32, i32
  }
  func.func @transform_5(%arg0: i32) -> (i32, i32) {
    %c0_i32 = arith.constant 0 : i32
    %c0_i32_0 = arith.constant 0 : i32
    %c0_i32_1 = arith.constant 0 : i32
    return %c0_i32, %c0_i32_0 : i32, i32
  }
  func.func @transform_6(%arg0: i32) -> (i32, i32) {
    %c0_i32 = arith.constant 0 : i32
    %c0_i32_0 = arith.constant 0 : i32
    %c0_i32_1 = arith.constant 0 : i32
    return %c0_i32, %c0_i32_0 : i32, i32
  }
  func.func @transform_7(%arg0: i32) -> (i32, i32) {
    %c0_i32 = arith.constant 0 : i32
    %c0_i32_0 = arith.constant 0 : i32
    %c0_i32_1 = arith.constant 0 : i32
    return %c0_i32, %c0_i32_0 : i32, i32
  }
  func.func @transform_8(%arg0: i32) -> (i32, i32) {
    %c0_i32 = arith.constant 0 : i32
    %c0_i32_0 = arith.constant 0 : i32
    %c0_i32_1 = arith.constant 0 : i32
    return %c0_i32, %c0_i32_0 : i32, i32
  }
  func.func @transform_9(%arg0: i32) -> (i32, i32) {
    %c0_i32 = arith.constant 0 : i32
    %c0_i32_0 = arith.constant 0 : i32
    %c0_i32_1 = arith.constant 0 : i32
    return %c0_i32, %c0_i32_0 : i32, i32
  }
  func.func @transform_10(%arg0: i32) -> (i32, i32) {
    %c0_i32 = arith.constant 0 : i32
    %c0_i32_0 = arith.constant 0 : i32
    return %arg0, %c0_i32 : i32, i32
  }
}

</mosaic_0001>

<bundles_post_ra>
// kernel: vae_forward.1
= control target key start
LH: loop header
LB: loop body
LE: loop exit
PB: predicated region body
PF: predicated region fallthrough
CT: control target
= control target key end

     0   :  { %v4552_v1 = vmov 0.0   ;;  %s4541_s0 = inlined_call_operand.vmem [shape: f32[256,256], index: 0, kind: input, shape index: {}]   ;;  %s4542_s1 = inlined_call_operand.vmem [shape: f32[256,8], index: 1, kind: input, shape index: {}]   ;;  %s4543_s2 = inlined_call_operand.vmem [shape: f32[256,128], index: 2, kind: input, shape index: {}]   ;;  %s4544_s3 = inlined_call_operand.vmem [shape: f32[1,128], index: 3, kind: input, shape index: {}]   ;;  %s4545_s4 = inlined_call_operand.vmem [shape: f32[128,16], index: 4, kind: input, shape index: {}]   ;;  %s4546_s5 = inlined_call_operand.vmem [shape: f32[1,16], index: 5, kind: input, shape index: {}]   ;;  %s4547_s6 = inlined_call_operand.vmem [shape: f32[8,128], index: 6, kind: input, shape index: {}]   ;;  %s4548_s7 = inlined_call_operand.vmem [shape: f32[1,128], index: 7, kind: input, shape index: {}]   ;;  %s4549_s8 = inlined_call_operand.vmem [shape: f32[128,256], index: 8, kind: input, shape index: {}]   ;;  %s4550_s9 = inlined_call_operand.vmem [shape: f32[1,256], index: 9, kind: input, shape index: {}]   ;;  %s4551_s10 = inlined_call_operand.hbm [shape: f32[1,1], index: 10, kind: output, shape index: {}]  }
   0x1   :  { %v147_v0 = vld [vmem:[%s4543_s2 + $0x78] sm:$0xff]  ;;  %171 = vmatprep.subr.mxu0 %v4552_v1  ;;  %v146_v2 = vld [vmem:[%s4543_s2 + $0x70] sm:$0xff]  ;;  %v145_v3 = vld [vmem:[%s4543_s2 + $0x68] sm:$0xff] }
   0x2   :  { %172 = vmatpush1.msra.mxu0 %v147_v0  ;;  %v144_v4 = vld [vmem:[%s4543_s2 + $0x60] sm:$0xff]  ;;  %v143_v5 = vld [vmem:[%s4543_s2 + $0x58] sm:$0xff]  ;;  %v142_v6 = vld [vmem:[%s4543_s2 + $0x50] sm:$0xff] }
   0x3   :  { %173 = vmatprep.subr.mxu0 %v4552_v1  ;;  %v69_v7 = vld [vmem:[%s4541_s0 + $0x8] sm:$0xff]  ;;  %v140_v9 = vld [vmem:[%s4543_s2 + $0x40] sm:$0xff]  ;;  %v139_v10 = vld [vmem:[%s4543_s2 + $0x38] sm:$0xff] }
   0x4   :  { %174 = vmatpush1.msra.mxu0 %v146_v2  ;;  %v141_v8 = vld [vmem:[%s4543_s2 + $0x48] sm:$0xff]  ;;  %235 = vmatprep.mubr.f32.mxu0 %v69_v7  ;;  %v138_v11 = vld [vmem:[%s4543_s2 + $0x30] sm:$0xff]  ;;  %v136_v13 = vld [vmem:[%s4543_s2 + $0x20] sm:$0xff] }
   0x5   :  { %175 = vmatprep.subr.mxu0 %v4552_v1  ;;  %v137_v12 = vld [vmem:[%s4543_s2 + $0x28] sm:$0xff]  ;;  %v2859_v14 = vld [vmem:[%s4545_s4 + $0x78] sm:$0xff]  ;;  %v2869_v16 = vld [vmem:[%s4545_s4 + $0x70] sm:$0xff] }
   0x6   :  { %176 = vmatpush1.msra.mxu0 %v145_v3  ;;  %2549 = vmatprep.subr.mxu1 %v2859_v14  ;;  %v135_v15 = vld [vmem:[%s4543_s2 + $0x18] sm:$0xff]  ;;  %v134_v17 = vld [vmem:[%s4543_s2 + $0x10] sm:$0xff]  ;;  %v2880_v18 = vld [vmem:[%s4545_s4 + $0x68] sm:$0xff] }
   0x7   :  { %177 = vmatprep.subr.mxu0 %v4552_v1  ;;  %2565 = vmatpush3.msra.mxu1 %v2859_v14  ;;  %v133_v19 = vld [vmem:[%s4543_s2 + $0x8] sm:$0xff]  ;;  %v2891_v20 = vld [vmem:[%s4545_s4 + $0x60] sm:$0xff]  ;;  %v2902_v22 = vld [vmem:[%s4545_s4 + $0x58] sm:$0xff] }
   0x8   :  { %178 = vmatpush1.msra.mxu0 %v144_v4  ;;  %2550 = vmatprep.subr.mxu1 %v2869_v16  ;;  %v132_v21 = vld [vmem:[%s4543_s2] sm:$0xff] }
   0x9   :  { %179 = vmatprep.subr.mxu0 %v4552_v1  ;;  %2566 = vmatpush3.msra.mxu1 %v2869_v16 }
   0xa   :  { %180 = vmatpush1.msra.mxu0 %v143_v5  ;;  %2551 = vmatprep.subr.mxu1 %v2880_v18 }
   0xb   :  { %181 = vmatprep.subr.mxu0 %v4552_v1  ;;  %2567 = vmatpush3.msra.mxu1 %v2880_v18 }
   0xc   :  { %182 = vmatpush1.msra.mxu0 %v142_v6  ;;  %2552 = vmatprep.subr.mxu1 %v2891_v20 }
   0xd   :  { %183 = vmatprep.subr.mxu0 %v4552_v1  ;;  %2568 = vmatpush3.msra.mxu1 %v2891_v20 }
   0xe   :  { %184 = vmatpush1.msra.mxu0 %v141_v8  ;;  %2553 = vmatprep.subr.mxu1 %v2902_v22 }
   0xf   :  { %185 = vmatprep.subr.mxu0 %v4552_v1 }
  0x10   :  { %186 = vmatpush1.msra.mxu0 %v140_v9 }
  0x11   :  { %187 = vmatprep.subr.mxu0 %v4552_v1 }
  0x12   :  { %188 = vmatpush1.msra.mxu0 %v139_v10 }
  0x13   :  { %189 = vmatprep.subr.mxu0 %v4552_v1 }
  0x14   :  { %190 = vmatpush1.msra.mxu0 %v138_v11 }
  0x15   :  { %191 = vmatprep.subr.mxu0 %v4552_v1 }
  0x16   :  { %192 = vmatpush1.msra.mxu0 %v137_v12 }
  0x17   :  { %193 = vmatprep.subr.mxu0 %v4552_v1 }
  0x18   :  { %194 = vmatpush1.msra.mxu0 %v136_v13 }
  0x19   :  { %195 = vmatprep.subr.mxu0 %v4552_v1 }
  0x1a   :  { %196 = vmatpush1.msra.mxu0 %v135_v15 }
  0x1b   :  { %197 = vmatprep.subr.mxu0 %v4552_v1 }
  0x1c   :  { %198 = vmatpush1.msra.mxu0 %v134_v17 }
  0x1d   :  { %199 = vmatprep.subr.mxu0 %v4552_v1 }
  0x1e   :  { %200 = vmatpush1.msra.mxu0 %v133_v19 }
  0x1f   :  { %15 = vsyncpa [#allocation3], 0  ;;  %201 = vmatprep.subr.mxu0 %v4552_v1  ;;  %v163_v23 = vld [vmem:[%s4543_s2 + $0xf8] sm:$0xff]  ;;  %v2913_v24 = vld [vmem:[%s4545_s4 + $0x50] sm:$0xff]  ;;  %2569 = vmatpush3.msra.mxu1 %v2902_v22  ;;  %s2748_s12 = smov 8   ;;  %vm1068_vm0 = vcmask 64512  }
  0x20   :  { %202 = vmatpush1.msra.mxu0 %v132_v21  ;;  %2554 = vmatprep.subr.mxu1 %v2913_v24  ;;  %v162_v25 = vld [vmem:[%s4543_s2 + $0xf0] sm:$0xff]  ;;  %v2924_v26 = vld [vmem:[%s4545_s4 + $0x48] sm:$0xff]  ;;  %v2935_v28 = vld [vmem:[%s4545_s4 + $0x40] sm:$0xff] }
  0x21   :  { %203 = vmatprep.subr.mxu0 %v4552_v1  ;;  %2570 = vmatpush3.msra.mxu1 %v2913_v24  ;;  %v161_v27 = vld [vmem:[%s4543_s2 + $0xe8] sm:$0xff]  ;;  %v160_v29 = vld [vmem:[%s4543_s2 + $0xe0] sm:$0xff]  ;;  %v2946_v30 = vld [vmem:[%s4545_s4 + $0x38] sm:$0xff] }
  0x22   :  { %204 = vmatpush2.msra.mxu0 %v163_v23  ;;  %2555 = vmatprep.subr.mxu1 %v2924_v26  ;;  %v159_v31 = vld [vmem:[%s4543_s2 + $0xd8] sm:$0xff]  ;;  %v2957_v32 = vld [vmem:[%s4545_s4 + $0x30] sm:$0xff]  ;;  %v2968_v34 = vld [vmem:[%s4545_s4 + $0x28] sm:$0xff] }
  0x23   :  { %205 = vmatprep.subr.mxu0 %v4552_v1  ;;  %2571 = vmatpush3.msra.mxu1 %v2924_v26  ;;  %v158_v33 = vld [vmem:[%s4543_s2 + $0xd0] sm:$0xff]  ;;  %v157_v35 = vld [vmem:[%s4543_s2 + $0xc8] sm:$0xff]  ;;  %v2979_v36 = vld [vmem:[%s4545_s4 + $0x20] sm:$0xff] }
  0x24   :  { %206 = vmatpush2.msra.mxu0 %v162_v25  ;;  %2556 = vmatprep.subr.mxu1 %v2935_v28  ;;  %v156_v37 = vld [vmem:[%s4543_s2 + $0xc0] sm:$0xff]  ;;  %v155_v38 = vld [vmem:[%s4543_s2 + $0xb8] sm:$0xff]  ;;  %v154_v39 = vld [vmem:[%s4543_s2 + $0xb0] sm:$0xff] }
  0x25   :  { %207 = vmatprep.subr.mxu0 %v4552_v1  ;;  %2572 = vmatpush3.msra.mxu1 %v2935_v28  ;;  %v2999_v40 = vld [vmem:[%s4545_s4 + $0x18] sm:$0xff]  ;;  %v153_v41 = vld [vmem:[%s4543_s2 + $0xa8] sm:$0xff]  ;;  %v152_v42 = vld [vmem:[%s4543_s2 + $0xa0] sm:$0xff] }
  0x26   :  { %208 = vmatpush2.msra.mxu0 %v161_v27  ;;  %2557 = vmatprep.subr.mxu1 %v2946_v30  ;;  %v151_v43 = vld [vmem:[%s4543_s2 + $0x98] sm:$0xff]  ;;  %v150_v44 = vld [vmem:[%s4543_s2 + $0x90] sm:$0xff]  ;;  %v149_v46 = vld [vmem:[%s4543_s2 + $0x88] sm:$0xff] }
  0x27   :  { %209 = vmatprep.subr.mxu0 %v4552_v1  ;;  %2573 = vmatpush3.msra.mxu1 %v2946_v30  ;;  %v3022_v45 = vld [vmem:[%s4545_s4 + $0x10] sm:$0xff]  ;;  %v148_v47 = vld [vmem:[%s4543_s2 + $0x80] sm:$0xff]  ;;  %v3037_v48 = vld [vmem:[%s4545_s4 + $0x8] sm:$0xff] }
  0x28   :  { %210 = vmatpush2.msra.mxu0 %v160_v29  ;;  %2558 = vmatprep.subr.mxu1 %v2957_v32  ;;  %v68_v49 = vld [vmem:[%s4541_s0] sm:$0xff]  ;;  %v71_v50 = vld [vmem:[%s4541_s0 + $0x18] sm:$0xff]  ;;  %v70_v51 = vld [vmem:[%s4541_s0 + $0x10] sm:$0xff] }
  0x29   :  { %211 = vmatprep.subr.mxu0 %v4552_v1  ;;  %2574 = vmatpush3.msra.mxu1 %v2957_v32  ;;  %v73_v52 = vld [vmem:[%s4541_s0 + $0x28] sm:$0xff]  ;;  %v72_v53 = vld [vmem:[%s4541_s0 + $0x20] sm:$0xff]  ;;  %v75_v54 = vld [vmem:[%s4541_s0 + $0x38] sm:$0xff] }
  0x2a   :  { %212 = vmatpush2.msra.mxu0 %v159_v31  ;;  %2559 = vmatprep.subr.mxu1 %v2968_v34  ;;  %v74_v55 = vld [vmem:[%s4541_s0 + $0x30] sm:$0xff]  ;;  %v77_v56 = vld [vmem:[%s4541_s0 + $0x48] sm:$0xff]  ;;  %v76_v57 = vld [vmem:[%s4541_s0 + $0x40] sm:$0xff] }
  0x2b   :  { %213 = vmatprep.subr.mxu0 %v4552_v1  ;;  %2575 = vmatpush3.msra.mxu1 %v2968_v34  ;;  %v79_v58 = vld [vmem:[%s4541_s0 + $0x58] sm:$0xff]  ;;  %v78_v59 = vld [vmem:[%s4541_s0 + $0x50] sm:$0xff]  ;;  %v81_v60 = vld [vmem:[%s4541_s0 + $0x68] sm:$0xff] }
  0x2c   :  { %214 = vmatpush2.msra.mxu0 %v158_v33  ;;  %2560 = vmatprep.subr.mxu1 %v2979_v36  ;;  %v80_v61 = vld [vmem:[%s4541_s0 + $0x60] sm:$0xff]  ;;  %v83_v62 = vld [vmem:[%s4541_s0 + $0x78] sm:$0xff]  ;;  %v82_v63 = vld [vmem:[%s4541_s0 + $0x70] sm:$0xff] }
  0x2d   :  { %215 = vmatprep.subr.mxu0 %v4552_v1  ;;  %2576 = vmatpush3.msra.mxu1 %v2979_v36  ;;  %v85_v0 = vld [vmem:[%s4541_s0 + $0x88] sm:$0xff]  ;;  %v84_v2 = vld [vmem:[%s4541_s0 + $0x80] sm:$0xff]  ;;  %v87_v3 = vld [vmem:[%s4541_s0 + $0x98] sm:$0xff] }
  0x2e   :  { %216 = vmatpush2.msra.mxu0 %v157_v35  ;;  %2561 = vmatprep.subr.mxu1 %v2999_v40  ;;  %v86_v4 = vld [vmem:[%s4541_s0 + $0x90] sm:$0xff]  ;;  %v89_v5 = vld [vmem:[%s4541_s0 + $0xa8] sm:$0xff]  ;;  %v88_v6 = vld [vmem:[%s4541_s0 + $0xa0] sm:$0xff] }
  0x2f   :  { %217 = vmatprep.subr.mxu0 %v4552_v1  ;;  %2577 = vmatpush3.msra.mxu1 %v2999_v40  ;;  %v91_v7 = vld [vmem:[%s4541_s0 + $0xb8] sm:$0xff]  ;;  %v90_v8 = vld [vmem:[%s4541_s0 + $0xb0] sm:$0xff]  ;;  %v93_v9 = vld [vmem:[%s4541_s0 + $0xc8] sm:$0xff] }
  0x30   :  { %218 = vmatpush2.msra.mxu0 %v156_v37  ;;  %2562 = vmatprep.subr.mxu1 %v3022_v45  ;;  %v92_v10 = vld [vmem:[%s4541_s0 + $0xc0] sm:$0xff]  ;;  %v95_v11 = vld [vmem:[%s4541_s0 + $0xd8] sm:$0xff]  ;;  %v94_v12 = vld [vmem:[%s4541_s0 + $0xd0] sm:$0xff] }
  0x31   :  { %219 = vmatprep.subr.mxu0 %v4552_v1  ;;  %2578 = vmatpush3.msra.mxu1 %v3022_v45  ;;  %v97_v13 = vld [vmem:[%s4541_s0 + $0xe8] sm:$0xff]  ;;  %v99_v15 = vld [vmem:[%s4541_s0 + $0xf8] sm:$0xff]  ;;  %v104_v23 = vld [vmem:[%s4541_s0 + $0x120] sm:$0xff] }
  0x32   :  { %220 = vmatpush2.msra.mxu0 %v155_v38  ;;  %2563 = vmatprep.subr.mxu1 %v3037_v48  ;;  %v101_v17 = vld [vmem:[%s4541_s0 + $0x108] sm:$0xff]  ;;  %v103_v19 = vld [vmem:[%s4541_s0 + $0x118] sm:$0xff]  ;;  %v106_v25 = vld [vmem:[%s4541_s0 + $0x130] sm:$0xff] }
  0x33   :  { %221 = vmatprep.subr.mxu0 %v4552_v1  ;;  %2579 = vmatpush3.msra.mxu1 %v3037_v48  ;;  %v105_v21 = vld [vmem:[%s4541_s0 + $0x128] sm:$0xff]  ;;  %v108_v27 = vld [vmem:[%s4541_s0 + $0x140] sm:$0xff]  ;;  %v110_v29 = vld [vmem:[%s4541_s0 + $0x150] sm:$0xff] }
  0x34   :  { %222 = vmatpush2.msra.mxu0 %v154_v39  ;;  %v112_v31 = vld [vmem:[%s4541_s0 + $0x160] sm:$0xff]  ;;  %v114_v33 = vld [vmem:[%s4541_s0 + $0x170] sm:$0xff]  ;;  %v121_v38 = vld [vmem:[%s4541_s0 + $0x1a8] sm:$0xff] }
  0x35   :  { %223 = vmatprep.subr.mxu0 %v4552_v1  ;;  %v116_v35 = vld [vmem:[%s4541_s0 + $0x180] sm:$0xff]  ;;  %v118_v37 = vld [vmem:[%s4541_s0 + $0x190] sm:$0xff] }
  0x36   :  { %224 = vmatpush2.msra.mxu0 %v153_v41  ;;  %v120_v39 = vld [vmem:[%s4541_s0 + $0x1a0] sm:$0xff]  ;;  %v122_v41 = vld [vmem:[%s4541_s0 + $0x1b0] sm:$0xff] }
  0x37   :  { %225 = vmatprep.subr.mxu0 %v4552_v1 }
  0x38   :  { %226 = vmatpush2.msra.mxu0 %v152_v42  ;;  %v125_v42 = vld [vmem:[%s4541_s0 + $0x1c8] sm:$0xff] }
  0x39   :  { %227 = vmatprep.subr.mxu0 %v4552_v1 }
  0x3a   :  { %228 = vmatpush2.msra.mxu0 %v151_v43  ;;  %v124_v43 = vld [vmem:[%s4541_s0 + $0x1c0] sm:$0xff] }
  0x3b   :  { %229 = vmatprep.subr.mxu0 %v4552_v1 }
  0x3c   :  { %230 = vmatpush2.msra.mxu0 %v150_v44  ;;  %v127_v44 = vld [vmem:[%s4541_s0 + $0x1d8] sm:$0xff] }
  0x3d   :  { %231 = vmatprep.subr.mxu0 %v4552_v1 }
  0x3e   :  { %232 = vmatpush2.msra.mxu0 %v149_v46  ;;  %v129_v46 = vld [vmem:[%s4541_s0 + $0x1e8] sm:$0xff] }
  0x3f   :  { %233 = vmatprep.subr.mxu0 %v4552_v1 }
  0x40   :  { %234 = vmatpush2.msra.mxu0 %v148_v47  ;;  %v128_v47 = vld [vmem:[%s4541_s0 + $0x1e0] sm:$0xff] }
  0x41   :  { %236 = vmatmul.mubr.f32.vlgmr.msra.gmra.mxu0 %v68_v49  ;;  %2419 = vmatprep.subr.mxu0 %v2859_v14  ;;  %v130_v49 = vld [vmem:[%s4541_s0 + $0x1f0] sm:$0xff] }
  0x42   :  { %240 = vmatprep.mubr.f32.mxu0 %v71_v50  ;;  %2420 = vmatpush3.msra.mxu0 %v2859_v14  ;;  %v96_v14 = vld [vmem:[%s4541_s0 + $0xe0] sm:$0xff] }
  0x43   :  { %2421 = vmatprep.subr.mxu0 %v2869_v16  ;;  %v3267_v50 = vld [vmem:[%s4542_s1] sm:$0xff] }
  0x44   :  { %2422 = vmatpush3.msra.mxu0 %v2869_v16  ;;  %v98_v16 = vld [vmem:[%s4541_s0 + $0xf0] sm:$0xff]  ;;  %772 = vrot.lane.b32.xlu0 %v3267_v50, %s2748_s12 }
  0x45   :  { %241 = vmatmul.mubr.f32.gmra.mxu0 %v70_v51  ;;  %2423 = vmatprep.subr.mxu0 %v2880_v18  ;;  %v3272_v51 = vld [vmem:[%s4542_s1 + $0x10] sm:$0xff] }
  0x46   :  { %245 = vmatprep.mubr.f32.mxu0 %v73_v52  ;;  %2424 = vmatpush3.msra.mxu0 %v2880_v18  ;;  %v100_v18 = vld [vmem:[%s4541_s0 + $0x100] sm:$0xff]  ;;  %v3281_v52 = vld [vmem:[%s4542_s1 + $0x8] sm:$0xff] }
  0x47   :  { %2425 = vmatprep.subr.mxu0 %v2891_v20  ;;  %776 = vrot.lane.b32.xlu1 %v3272_v51, %s2748_s12 }
  0x48   :  { %2426 = vmatpush3.msra.mxu0 %v2891_v20  ;;  %v102_v20 = vld [vmem:[%s4541_s0 + $0x110] sm:$0xff]  ;;  %774 = vrot.lane.b32.xlu0 %v3281_v52, %s2748_s12 }
  0x49   :  { %246 = vmatmul.mubr.f32.gmra.mxu0 %v72_v53  ;;  %2427 = vmatprep.subr.mxu0 %v2902_v22  ;;  %v3286_v53 = vld [vmem:[%s4542_s1 + $0x18] sm:$0xff] }
  0x4a   :  { %250 = vmatprep.mubr.f32.mxu0 %v75_v54  ;;  %2428 = vmatpush3.msra.mxu0 %v2902_v22  ;;  %v428_v22 = vld [vmem:[%s4545_s4] sm:$0xff]  ;;  %v3295_v54 = vld [vmem:[%s4542_s1 + $0x28] sm:$0xff] }
  0x4b   :  { %2429 = vmatprep.subr.mxu0 %v2913_v24  ;;  %2564 = vmatprep.subr.mxu1 %v428_v22 }
  0x4c   :  { %2430 = vmatpush3.msra.mxu0 %v2913_v24  ;;  %v107_v24 = vld [vmem:[%s4541_s0 + $0x138] sm:$0xff]  ;;  %2580 = vmatpush3.msra.mxu1 %v428_v22 }
  0x4d   :  { %251 = vmatmul.mubr.f32.gmra.mxu0 %v74_v55  ;;  %2431 = vmatprep.subr.mxu0 %v2924_v26  ;;  %v3300_v55 = vld [vmem:[%s4542_s1 + $0x20] sm:$0xff] }
  0x4e   :  { %255 = vmatprep.mubr.f32.mxu0 %v77_v56  ;;  %2432 = vmatpush3.msra.mxu0 %v2924_v26  ;;  %v109_v26 = vld [vmem:[%s4541_s0 + $0x148] sm:$0xff]  ;;  %v3309_v56 = vld [vmem:[%s4542_s1 + $0x38] sm:$0xff] }
  0x4f   :  { %2433 = vmatprep.subr.mxu0 %v2935_v28  ;;  %778 = vrot.lane.b32.xlu1 %v3286_v53, %s2748_s12 }
  0x50   :  { %2434 = vmatpush3.msra.mxu0 %v2935_v28  ;;  %v111_v28 = vld [vmem:[%s4541_s0 + $0x158] sm:$0xff]  ;;  %780 = vrot.lane.b32.xlu0 %v3300_v55, %s2748_s12 }
  0x51   :  { %256 = vmatmul.mubr.f32.gmra.mxu0 %v76_v57  ;;  %2435 = vmatprep.subr.mxu0 %v2946_v30  ;;  %v3316_v57 = vld [vmem:[%s4542_s1 + $0x30] sm:$0xff] }
  0x52   :  { %260 = vmatprep.mubr.f32.mxu0 %v79_v58  ;;  %2436 = vmatpush3.msra.mxu0 %v2946_v30  ;;  %v113_v30 = vld [vmem:[%s4541_s0 + $0x168] sm:$0xff] }
  0x53   :  { %2437 = vmatprep.subr.mxu0 %v2957_v32  ;;  %782 = vrot.lane.b32.xlu1 %v3295_v54, %s2748_s12  ;;  %v3323_v58 = vld [vmem:[%s4542_s1 + $0x48] sm:$0xff] }
  0x54   :  { %2438 = vmatpush3.msra.mxu0 %v2957_v32  ;;  %v115_v32 = vld [vmem:[%s4541_s0 + $0x178] sm:$0xff]  ;;  %784 = vrot.lane.b32.xlu0 %v3316_v57, %s2748_s12 }
  0x55   :  { %261 = vmatmul.mubr.f32.gmra.mxu0 %v78_v59  ;;  %2439 = vmatprep.subr.mxu0 %v2968_v34  ;;  %v3330_v59 = vld [vmem:[%s4542_s1 + $0x40] sm:$0xff] }
  0x56   :  { %265 = vmatprep.mubr.f32.mxu0 %v81_v60  ;;  %2440 = vmatpush3.msra.mxu0 %v2968_v34  ;;  %v117_v34 = vld [vmem:[%s4541_s0 + $0x188] sm:$0xff]  ;;  %v3337_v60 = vld [vmem:[%s4542_s1 + $0x58] sm:$0xff] }
  0x57   :  { %2441 = vmatprep.subr.mxu0 %v2979_v36  ;;  %786 = vrot.lane.b32.xlu1 %v3309_v56, %s2748_s12 }
  0x58   :  { %2442 = vmatpush3.msra.mxu0 %v2979_v36  ;;  %v119_v36 = vld [vmem:[%s4541_s0 + $0x198] sm:$0xff]  ;;  %788 = vrot.lane.b32.xlu0 %v3330_v59, %s2748_s12 }
  0x59   :  { %266 = vmatmul.mubr.f32.gmra.mxu0 %v80_v61  ;;  %2443 = vmatprep.subr.mxu0 %v2999_v40  ;;  %v3344_v61 = vld [vmem:[%s4542_s1 + $0x50] sm:$0xff] }
  0x5a   :  { %270 = vmatprep.mubr.f32.mxu0 %v83_v62  ;;  %2444 = vmatpush3.msra.mxu0 %v2999_v40  ;;  %v123_v40 = vld [vmem:[%s4541_s0 + $0x1b8] sm:$0xff]  ;;  %v49_v62 = vld [vmem:[%s4542_s1 + $0x68] sm:$0xff] }
  0x5b   :  { %2445 = vmatprep.subr.mxu0 %v3022_v45  ;;  %790 = vrot.lane.b32.xlu1 %v3323_v58, %s2748_s12 }
  0x5c   :  { %2446 = vmatpush3.msra.mxu0 %v3022_v45  ;;  %v126_v45 = vld [vmem:[%s4541_s0 + $0x1d0] sm:$0xff]  ;;  %792 = vrot.lane.b32.xlu0 %v3344_v61, %s2748_s12 }
  0x5d   :  { %271 = vmatmul.mubr.f32.gmra.mxu0 %v82_v63  ;;  %2447 = vmatprep.subr.mxu0 %v3037_v48  ;;  %v48_v63 = vld [vmem:[%s4542_s1 + $0x60] sm:$0xff] }
  0x5e   :  { %275 = vmatprep.mubr.f32.mxu0 %v85_v0  ;;  %2448 = vmatpush3.msra.mxu0 %v3037_v48  ;;  %v131_v48 = vld [vmem:[%s4541_s0 + $0x1f8] sm:$0xff] }
  0x5f   :  { %2449 = vmatprep.subr.mxu0 %v428_v22  ;;  %794 = vrot.lane.b32.xlu1 %v3337_v60, %s2748_s12  ;;  %v51_v0 = vld [vmem:[%s4542_s1 + $0x78] sm:$0xff] }
  0x60   :  { %2450 = vmatpush3.msra.mxu0 %v428_v22  ;;  %796 = vrot.lane.b32.xlu0 %v48_v63, %s2748_s12 }
  0x61   :  { %276 = vmatmul.mubr.f32.gmra.mxu0 %v84_v2  ;;  %v50_v2 = vld [vmem:[%s4542_s1 + $0x70] sm:$0xff] }
  0x62   :  { %280 = vmatprep.mubr.f32.mxu0 %v87_v3  ;;  %v3367_v3 = vld [vmem:[%s4544_s3] ss:$0 sm:$0xff] }
  0x63   :  { %798 = vrot.lane.b32.xlu1 %v49_v62, %s2748_s12 }
  0x64   :  { %800 = vrot.lane.b32.xlu0 %v50_v2, %s2748_s12 }
  0x65   :  { %281 = vmatmul.mubr.f32.gmra.mxu0 %v86_v4 }
  0x66   :  { %285 = vmatprep.mubr.f32.mxu0 %v89_v5 }
  0x67   :  { %802 = vrot.lane.b32.xlu1 %v51_v0, %s2748_s12 }
  0x69   :  { %286 = vmatmul.mubr.f32.gmra.mxu0 %v88_v6 }
  0x6a   :  { %290 = vmatprep.mubr.f32.mxu0 %v91_v7 }
  0x6d   :  { %291 = vmatmul.mubr.f32.gmra.mxu0 %v90_v8 }
  0x6e   :  { %295 = vmatprep.mubr.f32.mxu0 %v93_v9 }
  0x71   :  { %296 = vmatmul.mubr.f32.gmra.mxu0 %v92_v10 }
  0x72   :  { %300 = vmatprep.mubr.f32.mxu0 %v95_v11 }
  0x75   :  { %301 = vmatmul.mubr.f32.gmra.mxu0 %v94_v12 }
  0x76   :  { %305 = vmatprep.mubr.f32.mxu0 %v97_v13 }
  0x79   :  { %306 = vmatmul.mubr.f32.gmra.mxu0 %v96_v14 }
  0x7a   :  { %310 = vmatprep.mubr.f32.mxu0 %v99_v15 }
  0x7d   :  { %311 = vmatmul.mubr.f32.gmra.mxu0 %v98_v16 }
  0x7e   :  { %315 = vmatprep.mubr.f32.mxu0 %v101_v17 }
  0x81   :  { %316 = vmatmul.mubr.f32.gmra.mxu0 %v100_v18 }
  0x82   :  { %320 = vmatprep.mubr.f32.mxu0 %v103_v19 }
  0x85   :  { %321 = vmatmul.mubr.f32.gmra.mxu0 %v102_v20 }
  0x86   :  { %325 = vmatprep.mubr.f32.mxu0 %v105_v21 }
  0x89   :  { %326 = vmatmul.mubr.f32.gmra.mxu0 %v104_v23 }
  0x8a   :  { %330 = vmatprep.mubr.f32.mxu0 %v107_v24 }
  0x8d   :  { %331 = vmatmul.mubr.f32.gmra.mxu0 %v106_v25 }
  0x8e   :  { %335 = vmatprep.mubr.f32.mxu0 %v109_v26 }
  0x91   :  { %336 = vmatmul.mubr.f32.gmra.mxu0 %v108_v27 }
  0x92   :  { %340 = vmatprep.mubr.f32.mxu0 %v111_v28 }
  0x95   :  { %341 = vmatmul.mubr.f32.gmra.mxu0 %v110_v29 }
  0x96   :  { %345 = vmatprep.mubr.f32.mxu0 %v113_v30 }
  0x99   :  { %346 = vmatmul.mubr.f32.gmra.mxu0 %v112_v31 }
  0x9a   :  { %350 = vmatprep.mubr.f32.mxu0 %v115_v32 }
  0x9d   :  { %351 = vmatmul.mubr.f32.gmra.mxu0 %v114_v33 }
  0x9e   :  { %355 = vmatprep.mubr.f32.mxu0 %v117_v34 }
  0xa1   :  { %356 = vmatmul.mubr.f32.gmra.mxu0 %v116_v35 }
  0xa2   :  { %360 = vmatprep.mubr.f32.mxu0 %v119_v36 }
  0xa5   :  { %361 = vmatmul.mubr.f32.gmra.mxu0 %v118_v37 }
  0xa6   :  { %365 = vmatprep.mubr.f32.mxu0 %v121_v38 }
  0xa9   :  { %366 = vmatmul.mubr.f32.gmra.mxu0 %v120_v39 }
  0xaa   :  { %370 = vmatprep.mubr.f32.mxu0 %v123_v40 }
  0xad   :  { %371 = vmatmul.mubr.f32.gmra.mxu0 %v122_v41 }
  0xae   :  { %375 = vmatprep.mubr.f32.mxu0 %v125_v42 }
  0xb1   :  { %376 = vmatmul.mubr.f32.gmra.mxu0 %v124_v43 }
  0xb2   :  { %380 = vmatprep.mubr.f32.mxu0 %v127_v44 }
  0xb5   :  { %381 = vmatmul.mubr.f32.gmra.mxu0 %v126_v45 }
  0xb6   :  { %385 = vmatprep.mubr.f32.mxu0 %v129_v46 }
  0xb9   :  { %386 = vmatmul.mubr.f32.gmra.mxu0 %v128_v47 }
  0xba   :  { %390 = vmatprep.mubr.f32.mxu0 %v131_v48 }
  0xbd   :  { %391 = vmatmul.mubr.f32.gmra.mxu0 %v130_v49 }
 0x101   :  { %v237_v4 = vpop.f32.mrf.mxu0 }
 0x102   :  { %v238_v5 = vadd.f32 %v3367_v3, %v237_v4 }
 0x103   :  { %v239_v6 = vpop.f32.mrf.mxu0 }
 0x104   :  { %v396_v7 = vmax.f32 %v238_v5, 0.0 }
 0x105   :  { %v242_v8 = vpop.f32.mrf.mxu0 }
 0x106   :  { %v243_v9 = vadd.f32 %v3367_v3, %v242_v8  ;;  %2451 = vmatprep.mubr.f32.mxu0 %v396_v7 }
 0x107   :  { %v244_v10 = vpop.f32.mrf.mxu0 }
 0x108   :  { %v397_v11 = vmax.f32 %v243_v9, 0.0 }
 0x109   :  { %v247_v12 = vpop.f32.mrf.mxu0 }
 0x10a   :  { %v248_v13 = vadd.f32 %v3367_v3, %v247_v12  ;;  %2452 = vmatmul.mubr.f32.vlgmr.msra.gmra.mxu0 %v397_v11 }
 0x10b   :  { %v249_v14 = vpop.f32.mrf.mxu0 }
 0x10c   :  { %v398_v15 = vmax.f32 %v248_v13, 0.0 }
 0x10d   :  { %v252_v16 = vpop.f32.mrf.mxu0 }
 0x10e   :  { %v253_v17 = vadd.f32 %v3367_v3, %v252_v16  ;;  %2454 = vmatprep.mubr.f32.mxu0 %v398_v15 }
 0x10f   :  { %v254_v18 = vpop.f32.mrf.mxu0 }
 0x110   :  { %v399_v19 = vmax.f32 %v253_v17, 0.0 }
 0x111   :  { %v257_v20 = vpop.f32.mrf.mxu0 }
 0x112   :  { %v258_v21 = vadd.f32 %v3367_v3, %v257_v20  ;;  %2455 = vmatmul.mubr.f32.gmra.mxu0 %v399_v19 }
 0x113   :  { %v259_v22 = vpop.f32.mrf.mxu0 }
 0x114   :  { %v400_v23 = vmax.f32 %v258_v21, 0.0 }
 0x115   :  { %v262_v24 = vpop.f32.mrf.mxu0 }
 0x116   :  { %v263_v25 = vadd.f32 %v3367_v3, %v262_v24  ;;  %2457 = vmatprep.mubr.f32.mxu0 %v400_v23 }
 0x117   :  { %v264_v26 = vpop.f32.mrf.mxu0 }
 0x118   :  { %v401_v27 = vmax.f32 %v263_v25, 0.0 }
 0x119   :  { %v267_v28 = vpop.f32.mrf.mxu0 }
 0x11a   :  { %v268_v29 = vadd.f32 %v3367_v3, %v267_v28  ;;  %2458 = vmatmul.mubr.f32.gmra.mxu0 %v401_v27 }
 0x11b   :  { %v269_v30 = vpop.f32.mrf.mxu0 }
 0x11c   :  { %v402_v31 = vmax.f32 %v268_v29, 0.0 }
 0x11d   :  { %v272_v32 = vpop.f32.mrf.mxu0 }
 0x11e   :  { %v273_v33 = vadd.f32 %v3367_v3, %v272_v32  ;;  %2460 = vmatprep.mubr.f32.mxu0 %v402_v31 }
 0x11f   :  { %v274_v34 = vpop.f32.mrf.mxu0 }
 0x120   :  { %v403_v35 = vmax.f32 %v273_v33, 0.0 }
 0x121   :  { %v277_v36 = vpop.f32.mrf.mxu0 }
 0x122   :  { %v278_v37 = vadd.f32 %v3367_v3, %v277_v36  ;;  %2461 = vmatmul.mubr.f32.gmra.mxu0 %v403_v35 }
 0x123   :  { %v279_v38 = vpop.f32.mrf.mxu0 }
 0x124   :  { %v404_v39 = vmax.f32 %v278_v37, 0.0 }
 0x125   :  { %v282_v40 = vpop.f32.mrf.mxu0 }
 0x126   :  { %v283_v41 = vadd.f32 %v3367_v3, %v282_v40  ;;  %2463 = vmatprep.mubr.f32.mxu0 %v404_v39 }
 0x127   :  { %v284_v42 = vpop.f32.mrf.mxu0 }
 0x128   :  { %v405_v43 = vmax.f32 %v283_v41, 0.0 }
 0x129   :  { %v287_v44 = vpop.f32.mrf.mxu0 }
 0x12a   :  { %v288_v45 = vadd.f32 %v3367_v3, %v287_v44  ;;  %2464 = vmatmul.mubr.f32.gmra.mxu0 %v405_v43 }
 0x12b   :  { %v289_v46 = vpop.f32.mrf.mxu0 }
 0x12c   :  { %v406_v47 = vmax.f32 %v288_v45, 0.0 }
 0x12d   :  { %v292_v48 = vpop.f32.mrf.mxu0 }
 0x12e   :  { %v293_v49 = vadd.f32 %v3367_v3, %v292_v48  ;;  %2466 = vmatprep.mubr.f32.mxu0 %v406_v47 }
 0x12f   :  { %v294_v62 = vpop.f32.mrf.mxu0 }
 0x130   :  { %v407_v63 = vmax.f32 %v293_v49, 0.0 }
 0x131   :  { %v297_v0 = vpop.f32.mrf.mxu0 }
 0x132   :  { %v298_v2 = vadd.f32 %v3367_v3, %v297_v0  ;;  %2467 = vmatmul.mubr.f32.gmra.mxu0 %v407_v63 }
 0x133   :  { %v299_v4 = vpop.f32.mrf.mxu0 }
 0x134   :  { %v408_v5 = vmax.f32 %v298_v2, 0.0 }
 0x135   :  { %v302_v6 = vpop.f32.mrf.mxu0 }
 0x136   :  { %v303_v7 = vadd.f32 %v3367_v3, %v302_v6  ;;  %2469 = vmatprep.mubr.f32.mxu0 %v408_v5 }
 0x137   :  { %v304_v8 = vpop.f32.mrf.mxu0 }
 0x138   :  { %v409_v9 = vmax.f32 %v303_v7, 0.0 }
 0x139   :  { %v307_v10 = vpop.f32.mrf.mxu0 }
 0x13a   :  { %v308_v11 = vadd.f32 %v3367_v3, %v307_v10  ;;  %2470 = vmatmul.mubr.f32.gmra.mxu0 %v409_v9 }
 0x13b   :  { %v309_v12 = vpop.f32.mrf.mxu0 }
 0x13c   :  { %v410_v13 = vmax.f32 %v308_v11, 0.0 }
 0x13d   :  { %v312_v14 = vpop.f32.mrf.mxu0 }
 0x13e   :  { %v313_v15 = vadd.f32 %v3367_v3, %v312_v14  ;;  %2472 = vmatprep.mubr.f32.mxu0 %v410_v13 }
 0x13f   :  { %v314_v16 = vpop.f32.mrf.mxu0 }
 0x140   :  { %v411_v17 = vmax.f32 %v313_v15, 0.0 }
 0x141   :  { %v317_v18 = vpop.f32.mrf.mxu0 }
 0x142   :  { %2473 = vmatmul.mubr.f32.gmra.mxu0 %v411_v17  ;;  %v318_v19 = vadd.f32 %v3367_v3, %v317_v18 }
 0x143   :  { %v319_v20 = vpop.f32.mrf.mxu0 }
 0x144   :  { %v412_v21 = vmax.f32 %v318_v19, 0.0 }
 0x145   :  { %v322_v22 = vpop.f32.mrf.mxu0 }
 0x146   :  { %v323_v23 = vadd.f32 %v3367_v3, %v322_v22  ;;  %2475 = vmatprep.mubr.f32.mxu0 %v412_v21 }
 0x147   :  { %v324_v24 = vpop.f32.mrf.mxu0 }
 0x148   :  { %v413_v25 = vmax.f32 %v323_v23, 0.0 }
 0x149   :  { %v327_v26 = vpop.f32.mrf.mxu0 }
 0x14a   :  { %v328_v27 = vadd.f32 %v3367_v3, %v327_v26  ;;  %2476 = vmatmul.mubr.f32.gmra.mxu0 %v413_v25 }
 0x14b   :  { %v329_v28 = vpop.f32.mrf.mxu0 }
 0x14c   :  { %v414_v29 = vmax.f32 %v328_v27, 0.0 }
 0x14d   :  { %v332_v30 = vpop.f32.mrf.mxu0 }
 0x14e   :  { %v333_v31 = vadd.f32 %v3367_v3, %v332_v30  ;;  %2478 = vmatprep.mubr.f32.mxu0 %v414_v29 }
 0x14f   :  { %v334_v32 = vpop.f32.mrf.mxu0 }
 0x150   :  { %v415_v33 = vmax.f32 %v333_v31, 0.0  ;;  %v3404_v32 = vld [vmem:[%s4546_s5] ss:$0 sm:$0xff] }
 0x151   :  { %v337_v34 = vpop.f32.mrf.mxu0 }
 0x152   :  { %v338_v35 = vadd.f32 %v3367_v3, %v337_v34  ;;  %2479 = vmatmul.mubr.f32.gmra.mxu0 %v415_v33 }
 0x153   :  { %v339_v36 = vpop.f32.mrf.mxu0 }
 0x154   :  { %v416_v37 = vmax.f32 %v338_v35, 0.0 }
 0x155   :  { %v342_v38 = vpop.f32.mrf.mxu0 }
 0x156   :  { %v343_v39 = vadd.f32 %v3367_v3, %v342_v38  ;;  %2481 = vmatprep.mubr.f32.mxu0 %v416_v37 }
 0x157   :  { %v344_v40 = vpop.f32.mrf.mxu0 }
 0x158   :  { %v417_v41 = vmax.f32 %v343_v39, 0.0 }
 0x159   :  { %v347_v42 = vpop.f32.mrf.mxu0 }
 0x15a   :  { %v348_v43 = vadd.f32 %v3367_v3, %v347_v42  ;;  %2482 = vmatmul.mubr.f32.gmra.mxu0 %v417_v41  ;;  %v773_v41 = vpop.permute.xlu0 %772  ;;  %v1060_v42 = vld [vmem:[%s4547_s6] sm:$0xff]  ;;  %s2749_s6 = smov 120  }
 0x15b   :  { %v349_v44 = vpop.f32.mrf.mxu0  ;;  %2499 = vmatprep.subr.mxu1 %v1060_v42 }
 0x15c   :  { %v418_v45 = vmax.f32 %v348_v43, 0.0 }
 0x15d   :  { %v352_v46 = vpop.f32.mrf.mxu0 }
 0x15e   :  { %v353_v47 = vadd.f32 %v3367_v3, %v352_v46  ;;  %2484 = vmatprep.mubr.f32.mxu0 %v418_v45 }
 0x15f   :  { %v354_v48 = vpop.f32.mrf.mxu0 }
 0x160   :  { %v419_v49 = vmax.f32 %v353_v47, 0.0  ;;  %v775_v47 = vpop.permute.xlu0 %774 }
 0x161   :  { %v357_v62 = vpop.f32.mrf.mxu0 }
 0x162   :  { %2485 = vmatmul.mubr.f32.gmra.mxu0 %v419_v49  ;;  %v358_v63 = vadd.f32 %v3367_v3, %v357_v62 }
 0x163   :  { %v359_v0 = vpop.f32.mrf.mxu0 }
 0x164   :  { %v420_v2 = vmax.f32 %v358_v63, 0.0  ;;  %v777_v63 = vpop.permute.xlu1 %776 }
 0x165   :  { %v362_v4 = vpop.f32.mrf.mxu0 }
 0x166   :  { %v363_v5 = vadd.f32 %v3367_v3, %v362_v4  ;;  %2487 = vmatprep.mubr.f32.mxu1 %v420_v2 }
 0x167   :  { %v364_v6 = vpop.f32.mrf.mxu0 }
 0x168   :  { %v421_v7 = vmax.f32 %v363_v5, 0.0 }
 0x169   :  { %v367_v8 = vpop.f32.mrf.mxu0 }
 0x16a   :  { %v368_v9 = vadd.f32 %v3367_v3, %v367_v8  ;;  %2488 = vmatmul.mubr.f32.vlgmr.msra.gmra.mxu1 %v421_v7  ;;  %v53_v8 = vld [vmem:[%s4542_s1 + $0x88] sm:$0xff] }
 0x16b   :  { %v369_v10 = vpop.f32.mrf.mxu0  ;;  %2500 = vmatpush3.msra.mxu1 %v1060_v42 }
 0x16c   :  { %v422_v11 = vmax.f32 %v368_v9, 0.0  ;;  %v779_v10 = vpop.permute.xlu1 %778 }
 0x16d   :  { %v372_v12 = vpop.f32.mrf.mxu0 }
 0x16e   :  { %v373_v13 = vadd.f32 %v3367_v3, %v372_v12  ;;  %2490 = vmatprep.mubr.f32.mxu1 %v422_v11  ;;  %v52_v11 = vld [vmem:[%s4542_s1 + $0x80] sm:$0xff] }
 0x16f   :  { %v374_v14 = vpop.f32.mrf.mxu0 }
 0x170   :  { %v423_v15 = vmax.f32 %v373_v13, 0.0 }
 0x171   :  { %v377_v16 = vpop.f32.mrf.mxu0 }
 0x172   :  { %v378_v17 = vadd.f32 %v3367_v3, %v377_v16  ;;  %2491 = vmatmul.mubr.f32.gmra.mxu1 %v423_v15 }
 0x173   :  { %v379_v18 = vpop.f32.mrf.mxu0 }
 0x174   :  { %v424_v19 = vmax.f32 %v378_v17, 0.0 }
 0x175   :  { %v382_v20 = vpop.f32.mrf.mxu0 }
 0x176   :  { %v383_v21 = vadd.f32 %v3367_v3, %v382_v20  ;;  %2493 = vmatprep.mubr.f32.mxu1 %v424_v19 }
 0x177   :  { %v384_v22 = vpop.f32.mrf.mxu0 }
 0x178   :  { %v425_v23 = vmax.f32 %v383_v21, 0.0  ;;  %v55_v21 = vld [vmem:[%s4542_s1 + $0x98] sm:$0xff] }
 0x179   :  { %v387_v24 = vpop.f32.mrf.mxu0 }
 0x17a   :  { %v388_v25 = vadd.f32 %v3367_v3, %v387_v24  ;;  %2494 = vmatmul.mubr.f32.gmra.mxu1 %v425_v23  ;;  %v783_v23 = vpop.permute.xlu1 %782  ;;  %v54_v24 = vld [vmem:[%s4542_s1 + $0x90] sm:$0xff] }
 0x17b   :  { %v389_v26 = vpop.f32.mrf.mxu0 }
 0x17c   :  { %v426_v27 = vmax.f32 %v388_v25, 0.0 }
 0x17d   :  { %v392_v28 = vpop.f32.mrf.mxu0 }
 0x17e   :  { %v393_v29 = vadd.f32 %v3367_v3, %v392_v28  ;;  %2496 = vmatprep.mubr.f32.mxu1 %v426_v27  ;;  %v781_v28 = vpop.permute.xlu0 %780 }
 0x17f   :  { %v394_v30 = vpop.f32.mrf.mxu0 }
 0x180   :  { %v427_v31 = vmax.f32 %v393_v29, 0.0 }
 0x182   :  { %2497 = vmatmul.mubr.f32.gmra.mxu1 %v427_v31 }
 0x1ca   :  { %v2453_v33 = vpop.f32.mrf.mxu0 }
 0x1cb   :  { %v3407_v34 = vadd.f32 %v2453_v33, %v3404_v32 }
 0x1cc   :  { %v517_v35 = vpop.f32.mrf.mxu0 }
 0x1cd   :  { %v678_v36 = vmul.f32 1.442695, %v3407_v34  ;;  %v3411_v37 = vadd.f32 %v3404_v32, %v517_v35 }
 0x1cf   :  { %2589 = vpow2.f32 %v678_v36  ;;  %v676_v3 = vmul.f32 1.442695, %v3411_v37 }
 0x1d1   :  { %2591 = vpow2.f32 %v676_v3  ;;  %v57_v3 = vld [vmem:[%s4542_s1 + $0xa8] sm:$0xff] }
 0x1d2   :  { %v2456_v38 = vpop.f32.mrf.mxu0 }
 0x1d3   :  { %v3415_v39 = vadd.f32 %v2456_v38, %v3404_v32 }
 0x1d4   :  { %v527_v40 = vpop.f32.mrf.mxu0 }
 0x1d5   :  { %v682_v43 = vmul.f32 1.442695, %v3415_v39  ;;  %v3422_v44 = vadd.f32 %v3404_v32, %v527_v40  ;;  %v787_v40 = vpop.permute.xlu1 %786 }
 0x1d7   :  { %2593 = vpow2.f32 %v682_v43  ;;  %v680_v45 = vmul.f32 1.442695, %v3422_v44 }
 0x1d9   :  { %2595 = vpow2.f32 %v680_v45 }
 0x1da   :  { %v2459_v46 = vpop.f32.mrf.mxu0 }
 0x1db   :  { %v3426_v48 = vadd.f32 %v2459_v46, %v3404_v32  ;;  %v785_v46 = vpop.permute.xlu0 %784 }
 0x1dc   :  { %v2590_v49 = vpop.eup %2589  ;;  %v537_v62 = vpop.f32.mrf.mxu0 }
 0x1dd   :  { %v686_v0 = vmul.f32 1.442695, %v3426_v48  ;;  %v3430_v2 = vadd.f32 %v3404_v32, %v537_v62  ;;  %v869_v4 = vmul.f32 %v2590_v49, %v775_v47 }
 0x1de   :  { %v2592_v5 = vpop.eup %2591 }
 0x1df   :  { %v868_v6 = vmul.f32 %v2592_v5, %v773_v41  ;;  %2597 = vpow2.f32 %v686_v0  ;;  %v684_v7 = vmul.f32 1.442695, %v3430_v2  ;;  %934 = vrot.lane.b32.xlu1 %v869_v4, %s2749_s6  ;;  %v56_v41 = vld [vmem:[%s4542_s1 + $0xa0] sm:$0xff]  ;;  %v59_v5 = vld [vmem:[%s4542_s1 + $0xb8] sm:$0xff] }
 0x1e1   :  { %2599 = vpow2.f32 %v684_v7  ;;  %932 = vrot.lane.b32.xlu0 %v868_v6, %s2749_s6  ;;  %v791_v7 = vpop.permute.xlu1 %790 }
 0x1e2   :  { %v2462_v9 = vpop.f32.mrf.mxu0 }
 0x1e3   :  { %v3442_v12 = vadd.f32 %v2462_v9, %v3404_v32  ;;  %806 = vrot.lane.b32.xlu1 %v53_v8, %s2748_s12  ;;  %v58_v8 = vld [vmem:[%s4542_s1 + $0xb0] sm:$0xff] }
 0x1e4   :  { %v2594_v13 = vpop.eup %2593  ;;  %v547_v14 = vpop.f32.mrf.mxu0 }
 0x1e5   :  { %v690_v15 = vmul.f32 1.442695, %v3442_v12  ;;  %v3447_v16 = vadd.f32 %v3404_v32, %v547_v14  ;;  %v871_v17 = vmul.f32 %v2594_v13, %v779_v10  ;;  %804 = vrot.lane.b32.xlu0 %v52_v11, %s2748_s12  ;;  %v789_v13 = vpop.permute.xlu0 %788 }
 0x1e6   :  { %v2596_v18 = vpop.eup %2595 }
 0x1e7   :  { %v870_v19 = vmul.f32 %v2596_v18, %v777_v63  ;;  %2601 = vpow2.f32 %v690_v15  ;;  %v688_v20 = vmul.f32 1.442695, %v3447_v16  ;;  %938 = vrot.lane.b32.xlu1 %v871_v17, %s2749_s6 }
 0x1e9   :  { %2603 = vpow2.f32 %v688_v20  ;;  %936 = vrot.lane.b32.xlu0 %v870_v19, %s2749_s6 }
 0x1ea   :  { %v2465_v22 = vpop.f32.mrf.mxu0 }
 0x1eb   :  { %v3460_v25 = vadd.f32 %v2465_v22, %v3404_v32  ;;  %810 = vrot.lane.b32.xlu1 %v55_v21, %s2748_s12  ;;  %v61_v21 = vld [vmem:[%s4542_s1 + $0xc8] sm:$0xff] }
 0x1ec   :  { %v2598_v26 = vpop.eup %2597  ;;  %v557_v27 = vpop.f32.mrf.mxu0 }
 0x1ed   :  { %v694_v29 = vmul.f32 1.442695, %v3460_v25  ;;  %v3465_v30 = vadd.f32 %v3404_v32, %v557_v27  ;;  %v873_v31 = vmul.f32 %v2598_v26, %v783_v23  ;;  %808 = vrot.lane.b32.xlu0 %v54_v24, %s2748_s12  ;;  %v795_v23 = vpop.permute.xlu1 %794  ;;  %v60_v24 = vld [vmem:[%s4542_s1 + $0xc0] sm:$0xff] }
 0x1ee   :  { %v2600_v33 = vpop.eup %2599 }
 0x1ef   :  { %2605 = vpow2.f32 %v694_v29  ;;  %v692_v35 = vmul.f32 1.442695, %v3465_v30  ;;  %v872_v36 = vmul.f32 %v2600_v33, %v781_v28  ;;  %942 = vrot.lane.b32.xlu1 %v873_v31, %s2749_s6  ;;  %v793_v29 = vpop.permute.xlu0 %792 }
 0x1f1   :  { %2607 = vpow2.f32 %v692_v35  ;;  %940 = vrot.lane.b32.xlu0 %v872_v36, %s2749_s6 }
 0x1f2   :  { %v2468_v38 = vpop.f32.mrf.mxu0 }
 0x1f3   :  { %v3478_v42 = vadd.f32 %v2468_v38, %v3404_v32  ;;  %814 = vrot.lane.b32.xlu1 %v57_v3, %s2748_s12 }
 0x1f4   :  { %v2602_v43 = vpop.eup %2601  ;;  %v567_v45 = vpop.f32.mrf.mxu0 }
 0x1f5   :  { %v698_v47 = vmul.f32 1.442695, %v3478_v42  ;;  %v3483_v49 = vadd.f32 %v3404_v32, %v567_v45  ;;  %v875_v62 = vmul.f32 %v2602_v43, %v787_v40  ;;  %812 = vrot.lane.b32.xlu0 %v56_v41, %s2748_s12  ;;  %v63_v40 = vld [vmem:[%s4542_s1 + $0xd8] sm:$0xff]  ;;  %v799_v41 = vpop.permute.xlu1 %798  ;;  %v62_v43 = vld [vmem:[%s4542_s1 + $0xd0] sm:$0xff] }
 0x1f6   :  { %v2604_v63 = vpop.eup %2603 }
 0x1f7   :  { %2609 = vpow2.f32 %v698_v47  ;;  %v696_v0 = vmul.f32 1.442695, %v3483_v49  ;;  %v874_v4 = vmul.f32 %v2604_v63, %v785_v46  ;;  %946 = vrot.lane.b32.xlu1 %v875_v62, %s2749_s6  ;;  %v797_v46 = vpop.permute.xlu0 %796 }
 0x1f9   :  { %2611 = vpow2.f32 %v696_v0  ;;  %944 = vrot.lane.b32.xlu0 %v874_v4, %s2749_s6  ;;  %v65_v0 = vld [vmem:[%s4542_s1 + $0xe8] sm:$0xff]  ;;  %v803_v4 = vpop.permute.xlu1 %802 }
 0x1fa   :  { %v2471_v6 = vpop.f32.mrf.mxu0 }
 0x1fb   :  { %v3496_v9 = vadd.f32 %v2471_v6, %v3404_v32  ;;  %818 = vrot.lane.b32.xlu1 %v59_v5, %s2748_s12  ;;  %v64_v5 = vld [vmem:[%s4542_s1 + $0xe0] sm:$0xff] }
 0x1fc   :  { %v2606_v10 = vpop.eup %2605  ;;  %v577_v11 = vpop.f32.mrf.mxu0 }
 0x1fd   :  { %v702_v14 = vmul.f32 1.442695, %v3496_v9  ;;  %v3501_v15 = vadd.f32 %v3404_v32, %v577_v11  ;;  %v877_v17 = vmul.f32 %v2606_v10, %v791_v7  ;;  %816 = vrot.lane.b32.xlu0 %v58_v8, %s2748_s12  ;;  %v801_v7 = vpop.permute.xlu0 %800 }
 0x1fe   :  { %v2608_v18 = vpop.eup %2607 }
 0x1ff   :  { %2613 = vpow2.f32 %v702_v14  ;;  %v700_v19 = vmul.f32 1.442695, %v3501_v15  ;;  %v876_v20 = vmul.f32 %v2608_v18, %v789_v13  ;;  %950 = vrot.lane.b32.xlu1 %v877_v17, %s2749_s6  ;;  %v67_v13 = vld [vmem:[%s4542_s1 + $0xf8] sm:$0xff]  ;;  %v66_v14 = vld [vmem:[%s4542_s1 + $0xf0] sm:$0xff] }
 0x201   :  { %2615 = vpow2.f32 %v700_v19  ;;  %948 = vrot.lane.b32.xlu0 %v876_v20, %s2749_s6 }
 0x202   :  { %v2474_v22 = vpop.f32.mrf.mxu0 }
 0x203   :  { %v3514_v26 = vadd.f32 %v2474_v22, %v3404_v32  ;;  %822 = vrot.lane.b32.xlu1 %v61_v21, %s2748_s12 }
 0x204   :  { %v2610_v27 = vpop.eup %2609  ;;  %v587_v28 = vpop.f32.mrf.mxu0 }
 0x205   :  { %v706_v31 = vmul.f32 1.442695, %v3514_v26  ;;  %v3519_v33 = vadd.f32 %v3404_v32, %v587_v28  ;;  %v879_v35 = vmul.f32 %v2610_v27, %v795_v23  ;;  %820 = vrot.lane.b32.xlu0 %v60_v24, %s2748_s12 }
 0x206   :  { %v2612_v36 = vpop.eup %2611 }
 0x207   :  { %2617 = vpow2.f32 %v706_v31  ;;  %v704_v3 = vmul.f32 1.442695, %v3519_v33  ;;  %v878_v38 = vmul.f32 %v2612_v36, %v793_v29  ;;  %954 = vrot.lane.b32.xlu1 %v879_v35, %s2749_s6 }
 0x209   :  { %2619 = vpow2.f32 %v704_v3  ;;  %952 = vrot.lane.b32.xlu0 %v878_v38, %s2749_s6 }
 0x20a   :  { %v2477_v17 = vpop.f32.mrf.mxu0 }
 0x20b   :  { %826 = vrot.lane.b32.xlu1 %v63_v40, %s2748_s12  ;;  %v3554_v18 = vadd.f32 %v2477_v17, %v3404_v32 }
 0x20c   :  { %v2614_v45 = vpop.eup %2613  ;;  %v597_v19 = vpop.f32.mrf.mxu0 }
 0x20d   :  { %v881_v47 = vmul.f32 %v2614_v45, %v799_v41  ;;  %824 = vrot.lane.b32.xlu0 %v62_v43, %s2748_s12  ;;  %v710_v20 = vmul.f32 1.442695, %v3554_v18  ;;  %v3558_v21 = vadd.f32 %v3404_v32, %v597_v19  ;;  %v3575_v41 = vmul.f32 %v3281_v52, %v3281_v52 }
 0x20e   :  { %v2616_v62 = vpop.eup %2615 }
 0x20f   :  { %v880_v63 = vmul.f32 %v2616_v62, %v797_v46  ;;  %958 = vrot.lane.b32.xlu1 %v881_v47, %s2749_s6  ;;  %2621 = vpow2.f32 %v710_v20  ;;  %v708_v23 = vmul.f32 1.442695, %v3558_v21 }
 0x211   :  { %956 = vrot.lane.b32.xlu0 %v880_v63, %s2749_s6  ;;  %2623 = vpow2.f32 %v708_v23  ;;  %v3583_v63 = vmul.f32 %v3267_v50, %v3267_v50 }
 0x212   :  { %v2480_v22 = vpop.f32.mrf.mxu0 }
 0x213   :  { %830 = vrot.lane.b32.xlu1 %v65_v0, %s2748_s12  ;;  %v3562_v24 = vadd.f32 %v2480_v22, %v3404_v32  ;;  %v3604_v22 = vmul.f32 %v3286_v53, %v3286_v53 }
 0x214   :  { %v2618_v6 = vpop.eup %2617  ;;  %v607_v27 = vpop.f32.mrf.mxu0 }
 0x215   :  { %v883_v8 = vmul.f32 %v2618_v6, %v803_v4  ;;  %828 = vrot.lane.b32.xlu0 %v64_v5, %s2748_s12  ;;  %v714_v28 = vmul.f32 1.442695, %v3562_v24  ;;  %v3566_v29 = vadd.f32 %v3404_v32, %v607_v27 }
 0x216   :  { %v2620_v10 = vpop.eup %2619 }
 0x217   :  { %v882_v11 = vmul.f32 %v2620_v10, %v801_v7  ;;  %962 = vrot.lane.b32.xlu1 %v883_v8, %s2749_s6  ;;  %2625 = vpow2.f32 %v714_v28  ;;  %v712_v36 = vmul.f32 1.442695, %v3566_v29 }
 0x219   :  { %960 = vrot.lane.b32.xlu0 %v882_v11, %s2749_s6  ;;  %2627 = vpow2.f32 %v712_v36 }
 0x21a   :  { %v2483_v31 = vpop.f32.mrf.mxu0 }
 0x21b   :  { %834 = vrot.lane.b32.xlu1 %v67_v13, %s2748_s12  ;;  %v3569_v35 = vadd.f32 %v2483_v31, %v3404_v32 }
 0x21c   :  { %v617_v3 = vpop.f32.mrf.mxu0  ;;  %v2622_v46 = vpop.eup %2621 }
 0x21d   :  { %832 = vrot.lane.b32.xlu0 %v66_v14, %s2748_s12  ;;  %v718_v38 = vmul.f32 1.442695, %v3569_v35  ;;  %v3579_v45 = vadd.f32 %v3404_v32, %v617_v3  ;;  %v3613_v3 = vmul.f32 %v3272_v51, %v3272_v51 }
 0x21e   :  { %v2624_v10 = vpop.eup %2623 }
 0x21f   :  { %2629 = vpow2.f32 %v718_v38  ;;  %v716_v6 = vmul.f32 1.442695, %v3579_v45 }
 0x221   :  { %2631 = vpow2.f32 %v716_v6 }
 0x222   :  { %v2486_v62 = vpop.f32.mrf.mxu0 }
 0x223   :  { %v3589_v5 = vadd.f32 %v2486_v62, %v3404_v32 }
 0x224   :  { %v627_v13 = vpop.f32.mrf.mxu0  ;;  %v2626_v28 = vpop.eup %2625 }
 0x225   :  { %v722_v19 = vmul.f32 1.442695, %v3589_v5  ;;  %v3609_v27 = vadd.f32 %v3404_v32, %v627_v13 }
 0x227   :  { %2633 = vpow2.f32 %v722_v19  ;;  %v3634_v19 = vmul.f32 %v3295_v54, %v3295_v54 }
 0x22a   :  { %v2489_v36 = vpop.f32.mrf.mxu1 }
 0x22c   :  { %v637_v6 = vpop.f32.mrf.mxu1 }
 0x251   :  { %v935_v40 = vpop.permute.xlu1 %934 }
 0x252   :  { %v1029_v43 = vadd.f32 %v935_v40, %v3407_v34 }
 0x253   :  { %v933_v47 = vpop.permute.xlu0 %932 }
 0x254   :  { %v3585_v0 = vmul.f32 %v1029_v43, %v1029_v43  ;;  %v1028_v4 = vadd.f32 %v933_v47, %v3411_v37 }
 0x255   :  { %v807_v52 = vpop.permute.xlu1 %806 }
 0x256   :  { %v3592_v7 = vmul.f32 %v1028_v4, %v1028_v4  ;;  %v885_v8 = vmul.f32 %v2622_v46, %v807_v52  ;;  %2501 = vmatprep.mubr.msk.f32.mxu1 %vm1068_vm0, %v1028_v4  ;;  %v720_v46 = vmul.f32 1.442695, %v3609_v27  ;;  %v2628_v4 = vpop.eup %2627 }
 0x257   :  { %2502 = vmatmul.mubr.msk.f32.vlgmr.msra.gmra.mxu1 %vm1068_vm0, %v1029_v43  ;;  %v805_v11 = vpop.permute.xlu0 %804  ;;  %v3619_v43 = vadd.f32 %v2489_v36, %v3404_v32  ;;  %v3643_v36 = vmul.f32 %v3300_v55, %v3300_v55 }
 0x258   :  { %v884_v14 = vmul.f32 %v2624_v10, %v805_v11  ;;  %966 = vrot.lane.b32.xlu1 %v885_v8, %s2749_s6  ;;  %2635 = vpow2.f32 %v720_v46 }
 0x259   :  { %v939_v20 = vpop.permute.xlu1 %938  ;;  %v726_v11 = vmul.f32 1.442695, %v3619_v43 }
 0x25a   :  { %v1031_v23 = vadd.f32 %v939_v20, %v3415_v39  ;;  %964 = vrot.lane.b32.xlu0 %v884_v14, %s2749_s6  ;;  %v2630_v14 = vpop.eup %2629 }
 0x25b   :  { %v937_v31 = vpop.permute.xlu0 %936  ;;  %2637 = vpow2.f32 %v726_v11 }
 0x25c   :  { %v3615_v38 = vmul.f32 %v1031_v23, %v1031_v23  ;;  %v1030_v53 = vadd.f32 %v937_v31, %v3422_v44  ;;  %v2492_v31 = vpop.f32.mrf.mxu1 }
 0x25d   :  { %v811_v40 = vpop.permute.xlu1 %810  ;;  %v3649_v46 = vadd.f32 %v2492_v31, %v3404_v32 }
 0x25e   :  { %v3622_v47 = vmul.f32 %v1030_v53, %v1030_v53  ;;  %v887_v62 = vmul.f32 %v2626_v28, %v811_v40  ;;  %2504 = vmatprep.mubr.msk.f32.mxu1 %vm1068_vm0, %v1030_v53 }
 0x25f   :  { %2505 = vmatmul.mubr.msk.f32.gmra.mxu1 %vm1068_vm0, %v1031_v23  ;;  %v809_v52 = vpop.permute.xlu0 %808  ;;  %v3639_v23 = vadd.f32 %v3404_v32, %v637_v6  ;;  %v2632_v6 = vpop.eup %2631  ;;  %v730_v31 = vmul.f32 1.442695, %v3649_v46 }
 0x260   :  { %v886_v8 = vmul.f32 %v2628_v4, %v809_v52  ;;  %970 = vrot.lane.b32.xlu1 %v887_v62, %s2749_s6 }
 0x261   :  { %v943_v13 = vpop.permute.xlu1 %942  ;;  %v724_v62 = vmul.f32 1.442695, %v3639_v23 }
 0x262   :  { %v1033_v20 = vadd.f32 %v943_v13, %v3426_v48  ;;  %968 = vrot.lane.b32.xlu0 %v886_v8, %s2749_s6  ;;  %v647_v13 = vpop.f32.mrf.mxu1 }
 0x263   :  { %v941_v28 = vpop.permute.xlu0 %940  ;;  %2639 = vpow2.f32 %v724_v62 }
 0x264   :  { %v3645_v53 = vmul.f32 %v1033_v20, %v1033_v20  ;;  %v1032_v40 = vadd.f32 %v941_v28, %v3430_v2  ;;  %2641 = vpow2.f32 %v730_v31 }
 0x265   :  { %v815_v54 = vpop.permute.xlu1 %814 }
 0x266   :  { %v3652_v4 = vmul.f32 %v1032_v40, %v1032_v40  ;;  %v889_v52 = vmul.f32 %v2630_v14, %v815_v54  ;;  %2507 = vmatprep.mubr.msk.f32.mxu1 %vm1068_vm0, %v1032_v40  ;;  %v2634_v14 = vpop.eup %2633  ;;  %v3664_v40 = vmul.f32 %v3309_v56, %v3309_v56 }
 0x267   :  { %2508 = vmatmul.mubr.msk.f32.gmra.mxu1 %vm1068_vm0, %v1033_v20  ;;  %v813_v8 = vpop.permute.xlu0 %812  ;;  %v3669_v20 = vadd.f32 %v3404_v32, %v647_v13  ;;  %v2636_v51 = vpop.eup %2635 }
 0x268   :  { %v888_v11 = vmul.f32 %v2632_v6, %v813_v8  ;;  %974 = vrot.lane.b32.xlu1 %v889_v52, %s2749_s6  ;;  %4566 = vst [vmem:[#allocation5_spill] sm:$0xff] %v3664_v40  ;;  %v2495_v6 = vpop.f32.mrf.mxu1  ;;  %v3673_v8 = vmul.f32 %v3316_v57, %v3316_v57 }
 0x269   :  { %v947_v10 = vpop.permute.xlu1 %946  ;;  %v3679_v62 = vadd.f32 %v2495_v6, %v3404_v32 }
 0x26a   :  { %v1035_v54 = vadd.f32 %v947_v10, %v3442_v12  ;;  %972 = vrot.lane.b32.xlu0 %v888_v11, %s2749_s6  ;;  %4567 = vst [vmem:[#allocation6_spill] sm:$0xff] %v3673_v8  ;;  %v728_v10 = vmul.f32 1.442695, %v3669_v20 }
 0x26b   :  { %v945_v52 = vpop.permute.xlu0 %944  ;;  %v734_v17 = vmul.f32 1.442695, %v3679_v62 }
 0x26c   :  { %v3675_v28 = vmul.f32 %v1035_v54, %v1035_v54  ;;  %v1034_v55 = vadd.f32 %v945_v52, %v3447_v16  ;;  %v657_v52 = vpop.f32.mrf.mxu1  ;;  %2643 = vpow2.f32 %v728_v10 }
 0x26d   :  { %v819_v56 = vpop.permute.xlu1 %818  ;;  %2645 = vpow2.f32 %v734_v17 }
 0x26e   :  { %4568 = vst [vmem:[#allocation7_spill] sm:$0xff] %v3675_v28  ;;  %v3682_v11 = vmul.f32 %v1034_v55, %v1034_v55  ;;  %v891_v13 = vmul.f32 %v2634_v14, %v819_v56  ;;  %2510 = vmatprep.mubr.msk.f32.mxu1 %vm1068_vm0, %v1034_v55  ;;  %v2638_v14 = vpop.eup %2637  ;;  %v3694_v55 = vmul.f32 %v3323_v58, %v3323_v58 }
 0x26f   :  { %2511 = vmatmul.mubr.msk.f32.gmra.mxu1 %vm1068_vm0, %v1035_v54  ;;  %v817_v1 = vpop.permute.xlu0 %816  ;;  %v2498_v54 = vpop.f32.mrf.mxu1 }
 0x270   :  { %4569 = vst [vmem:[#allocation8_spill] sm:$0xff] %v3682_v11  ;;  %v890_v31 = vmul.f32 %v2636_v51, %v817_v1  ;;  %978 = vrot.lane.b32.xlu1 %v891_v13, %s2749_s6  ;;  %v3699_v1 = vadd.f32 %v3404_v32, %v657_v52  ;;  %v3703_v13 = vmul.f32 %v3330_v59, %v3330_v59  ;;  %v2640_v11 = vpop.eup %2639  ;;  %v1451_v59 = vld [vmem:[%s4549_s8 + $0xe8] sm:$0xff] }
 0x271   :  { %v951_v50 = vpop.permute.xlu1 %950  ;;  %v3709_v10 = vadd.f32 %v2498_v54, %v3404_v32 }
 0x272   :  { %v1037_v56 = vadd.f32 %v951_v50, %v3460_v25  ;;  %976 = vrot.lane.b32.xlu0 %v890_v31, %s2749_s6  ;;  %v732_v50 = vmul.f32 1.442695, %v3699_v1 }
 0x273   :  { %v949_v51 = vpop.permute.xlu0 %948  ;;  %v738_v28 = vmul.f32 1.442695, %v3709_v10 }
 0x274   :  { %v3705_v6 = vmul.f32 %v1037_v56, %v1037_v56  ;;  %v1036_v57 = vadd.f32 %v949_v51, %v3465_v30  ;;  %v667_v51 = vpop.f32.mrf.mxu1  ;;  %2647 = vpow2.f32 %v732_v50 }
 0x275   :  { %v823_v58 = vpop.permute.xlu1 %822  ;;  %2649 = vpow2.f32 %v738_v28  ;;  %v1445_v28 = vld [vmem:[%s4549_s8 + $0xb8] sm:$0xff] }
 0x276   :  { %v3712_v31 = vmul.f32 %v1036_v57, %v1036_v57  ;;  %v893_v52 = vmul.f32 %v2638_v14, %v823_v58  ;;  %2513 = vmatprep.mubr.msk.f32.mxu1 %vm1068_vm0, %v1036_v57  ;;  %v2642_v14 = vpop.eup %2641  ;;  %v3724_v57 = vmul.f32 %v3337_v60, %v3337_v60 }
 0x277   :  { %2514 = vmatmul.mubr.msk.f32.gmra.mxu1 %vm1068_vm0, %v1037_v56  ;;  %v821_v8 = vpop.permute.xlu0 %820  ;;  %v3733_v56 = vmul.f32 %v3344_v61, %v3344_v61  ;;  %v1452_v61 = vld [vmem:[%s4549_s8 + $0xf0] sm:$0xff] }
 0x278   :  { %4570 = vst [vmem:[#allocation9_spill] sm:$0xff] %v3712_v31  ;;  %v892_v17 = vmul.f32 %v2640_v11, %v821_v8  ;;  %982 = vrot.lane.b32.xlu1 %v893_v52, %s2749_s6  ;;  %v3729_v8 = vadd.f32 %v3404_v32, %v667_v51 }
 0x279   :  { %v955_v40 = vpop.permute.xlu1 %954  ;;  %4571 = vst [vmem:[#allocation10_spill] sm:$0xff] %v3733_v56  ;;  %v2644_v51 = vpop.eup %2643 }
 0x27a   :  { %v1039_v58 = vadd.f32 %v955_v40, %v3478_v42  ;;  %980 = vrot.lane.b32.xlu0 %v892_v17, %s2749_s6  ;;  %v1453_v40 = vld [vmem:[%s4549_s8 + $0xf8] sm:$0xff]  ;;  %v736_v50 = vmul.f32 1.442695, %v3729_v8 }
 0x27b   :  { %v953_v11 = vpop.permute.xlu0 %952  ;;  %1466 = vmatprep.subr.mxu1 %v1453_v40  ;;  %v2646_v40 = vpop.eup %2645 }
 0x27c   :  { %v3735_v52 = vmul.f32 %v1039_v58, %v1039_v58  ;;  %v1038_v54 = vadd.f32 %v953_v11, %v3483_v49  ;;  %1467 = vmatpush1.msra.mxu1 %v1452_v61  ;;  %2651 = vpow2.f32 %v736_v50 }
 0x27d   :  { %v827_v60 = vpop.permute.xlu1 %826  ;;  %1468 = vmatprep.subr.mxu1 %v1451_v59  ;;  %v1448_v59 = vld [vmem:[%s4549_s8 + $0xd0] sm:$0xff] }
 0x27e   :  { %4572 = vst [vmem:[#allocation11_spill] sm:$0xff] %v3735_v52  ;;  %v3742_v17 = vmul.f32 %v1038_v54, %v1038_v54  ;;  %v895_v32 = vmul.f32 %v2642_v14, %v827_v60  ;;  %2516 = vmatprep.mubr.msk.f32.mxu1 %vm1068_vm0, %v1038_v54  ;;  %v1450_v54 = vld [vmem:[%s4549_s8 + $0xe0] sm:$0xff]  ;;  %v1447_v14 = vld [vmem:[%s4549_s8 + $0xc8] sm:$0xff] }
 0x27f   :  { %2517 = vmatmul.mubr.msk.f32.gmra.mxu1 %vm1068_vm0, %v1039_v58  ;;  %v825_v11 = vpop.permute.xlu0 %824  ;;  %v1449_v58 = vld [vmem:[%s4549_s8 + $0xd8] sm:$0xff]  ;;  %v1443_v52 = vld [vmem:[%s4549_s8 + $0xa8] sm:$0xff] }
 0x280   :  { %4573 = vst [vmem:[#allocation12_spill] sm:$0xff] %v3742_v17  ;;  %v894_v31 = vmul.f32 %v2644_v51, %v825_v11  ;;  %986 = vrot.lane.b32.xlu1 %v895_v32, %s2749_s6  ;;  %v2653_v51 = vld [vmem:[%s4542_s1 + $0x68] sm:$0xff]  ;;  %1469 = vmatpush1.msra.mxu1 %v1450_v54  ;;  %v1446_v54 = vld [vmem:[%s4549_s8 + $0xc0] sm:$0xff] }
 0x281   :  { %v959_v60 = vpop.permute.xlu1 %958  ;;  %v3766_v32 = vmul.f32 %v2653_v51, %v2653_v51  ;;  %1470 = vmatprep.subr.mxu1 %v1449_v58  ;;  %v2654_v51 = vld [vmem:[%s4542_s1 + $0x60] sm:$0xff] }
 0x282   :  { %v1041_v61 = vadd.f32 %v959_v60, %v3496_v9  ;;  %984 = vrot.lane.b32.xlu0 %v894_v31, %s2749_s6  ;;  %v3779_v50 = vmul.f32 %v2654_v51, %v2654_v51  ;;  %1471 = vmatpush1.msra.mxu1 %v1448_v59  ;;  %v1444_v59 = vld [vmem:[%s4549_s8 + $0xb0] sm:$0xff]  ;;  %v2648_v51 = vpop.eup %2647 }
 0x283   :  { %4574 = vst [vmem:[#allocation13_spill] sm:$0xff] %v3766_v32  ;;  %v957_v11 = vpop.permute.xlu0 %956  ;;  %1472 = vmatprep.subr.mxu1 %v1447_v14  ;;  %v1435_v32 = vld [vmem:[%s4549_s8 + $0x68] sm:$0xff] }
 0x284   :  { %4575 = vst [vmem:[#allocation14_spill] sm:$0xff] %v3779_v50  ;;  %v3781_v60 = vmul.f32 %v1041_v61, %v1041_v61  ;;  %v1040_v31 = vadd.f32 %v957_v11, %v3501_v15  ;;  %1473 = vmatpush1.msra.mxu1 %v1446_v54  ;;  %v1439_v54 = vld [vmem:[%s4549_s8 + $0x88] sm:$0xff] }
 0x285   :  { %v831_v58 = vpop.permute.xlu1 %830  ;;  %1474 = vmatprep.subr.mxu1 %v1445_v28  ;;  %v1441_v28 = vld [vmem:[%s4549_s8 + $0x98] sm:$0xff] }
 0x286   :  { %4576 = vst [vmem:[#allocation15_spill] sm:$0xff] %v3781_v60  ;;  %v3790_v17 = vmul.f32 %v1040_v31, %v1040_v31  ;;  %v897_v56 = vmul.f32 %v2646_v40, %v831_v58  ;;  %2519 = vmatprep.mubr.msk.f32.mxu1 %vm1068_vm0, %v1040_v31  ;;  %1475 = vmatpush1.msra.mxu1 %v1444_v59  ;;  %v1442_v31 = vld [vmem:[%s4549_s8 + $0xa0] sm:$0xff] }
 0x287   :  { %2520 = vmatmul.mubr.msk.f32.gmra.mxu1 %vm1068_vm0, %v1041_v61  ;;  %v829_v14 = vpop.permute.xlu0 %828  ;;  %1476 = vmatprep.subr.mxu1 %v1443_v52  ;;  %v2650_v61 = vpop.eup %2649  ;;  %v1440_v52 = vld [vmem:[%s4549_s8 + $0x90] sm:$0xff] }
 0x288   :  { %4577 = vst [vmem:[#allocation16_spill] sm:$0xff] %v3790_v17  ;;  %v896_v40 = vmul.f32 %v2648_v51, %v829_v14  ;;  %990 = vrot.lane.b32.xlu1 %v897_v56, %s2749_s6  ;;  %v2655_v51 = vld [vmem:[%s4542_s1 + $0x78] sm:$0xff]  ;;  %1477 = vmatpush1.msra.mxu1 %v1442_v31  ;;  %v1438_v31 = vld [vmem:[%s4549_s8 + $0x80] sm:$0xff] }
 0x289   :  { %v963_v58 = vpop.permute.xlu1 %962  ;;  %v3814_v56 = vmul.f32 %v2655_v51, %v2655_v51  ;;  %1478 = vmatprep.subr.mxu1 %v1441_v28  ;;  %v2656_v51 = vld [vmem:[%s4542_s1 + $0x70] sm:$0xff]  ;;  %v1437_v17 = vld [vmem:[%s4549_s8 + $0x78] sm:$0xff] }
 0x28a   :  { %v1043_v59 = vadd.f32 %v963_v58, %v3514_v26  ;;  %988 = vrot.lane.b32.xlu0 %v896_v40, %s2749_s6  ;;  %v3827_v11 = vmul.f32 %v2656_v51, %v2656_v51  ;;  %1479 = vmatpush1.msra.mxu1 %v1440_v52  ;;  %v1436_v52 = vld [vmem:[%s4549_s8 + $0x70] sm:$0xff]  ;;  %v2652_v51 = vpop.eup %2651 }
 0x28b   :  { %v961_v14 = vpop.permute.xlu0 %960  ;;  %1480 = vmatprep.subr.mxu1 %v1439_v54 }
 0x28c   :  { %v3829_v58 = vmul.f32 %v1043_v59, %v1043_v59  ;;  %v1042_v40 = vadd.f32 %v961_v14, %v3519_v33  ;;  %1481 = vmatpush1.msra.mxu1 %v1438_v31 }
 0x28d   :  { %v835_v28 = vpop.permute.xlu1 %834  ;;  %1482 = vmatprep.subr.mxu1 %v1437_v17  ;;  %v1433_v17 = vld [vmem:[%s4549_s8 + $0x58] sm:$0xff] }
 0x28e   :  { %v3838_v50 = vmul.f32 %v1042_v40, %v1042_v40  ;;  %v899_v60 = vmul.f32 %v2650_v61, %v835_v28  ;;  %2522 = vmatprep.mubr.msk.f32.mxu1 %vm1068_vm0, %v1042_v40  ;;  %v1866_v14 = vsub.f32 %v3814_v56, %v3829_v58  ;;  %1483 = vmatpush1.msra.mxu1 %v1436_v52  ;;  %v1434_v40 = vld [vmem:[%s4549_s8 + $0x60] sm:$0xff]  ;;  %v1429_v28 = vld [vmem:[%s4549_s8 + $0x38] sm:$0xff]  ;;  %v1428_v52 = vld [vmem:[%s4549_s8 + $0x30] sm:$0xff] }
 0x28f   :  { %2523 = vmatmul.mubr.msk.f32.gmra.mxu1 %vm1068_vm0, %v1043_v59  ;;  %v833_v54 = vpop.permute.xlu0 %832  ;;  %1484 = vmatprep.subr.mxu1 %v1435_v32  ;;  %v1431_v59 = vld [vmem:[%s4549_s8 + $0x48] sm:$0xff]  ;;  %v1430_v32 = vld [vmem:[%s4549_s8 + $0x40] sm:$0xff] }
 0x290   :  { %v898_v61 = vmul.f32 %v2652_v51, %v833_v54  ;;  %994 = vrot.lane.b32.xlu1 %v899_v60, %s2749_s6  ;;  %v1865_v31 = vsub.f32 %v3827_v11, %v3838_v50  ;;  %1485 = vmatpush1.msra.mxu1 %v1434_v40  ;;  %v1432_v60 = vld [vmem:[%s4549_s8 + $0x50] sm:$0xff]  ;;  %v1426_v51 = vld [vmem:[%s4549_s8 + $0x20] sm:$0xff]  ;;  %v2661_v58 = vld [vmem:[%s4542_s1 + $0xa8] sm:$0xff] }
 0x291   :  { %1486 = vmatprep.subr.mxu1 %v1433_v17  ;;  %v1424_v54 = vld [vmem:[%s4549_s8 + $0x10] sm:$0xff] }
 0x292   :  { %992 = vrot.lane.b32.xlu0 %v898_v61, %s2749_s6  ;;  %1487 = vmatpush1.msra.mxu1 %v1432_v60  ;;  %v1422_v61 = vld [vmem:[%s4549_s8] sm:$0xff] }
 0x293   :  { %1488 = vmatprep.subr.mxu1 %v1431_v59 }
 0x294   :  { %1949 = vrot.lane.b32.xlu1 %v3407_v34, %s2749_s6  ;;  %1489 = vmatpush1.msra.mxu1 %v1430_v32  ;;  %v1427_v34 = vld [vmem:[%s4549_s8 + $0x28] sm:$0xff] }
 0x295   :  { %1490 = vmatprep.subr.mxu1 %v1429_v28 }
 0x296   :  { %1947 = vrot.lane.b32.xlu0 %v3411_v37, %s2749_s6  ;;  %1491 = vmatpush1.msra.mxu1 %v1428_v52  ;;  %v1425_v37 = vld [vmem:[%s4549_s8 + $0x18] sm:$0xff]  ;;  %v4578_v52 = vsub.f32 %v3575_v41, %v3585_v0 }
 0x297   :  { %1492 = vmatprep.subr.mxu1 %v1427_v34 }
 0x298   :  { %1953 = vrot.lane.b32.xlu1 %v3415_v39, %s2749_s6  ;;  %1493 = vmatpush1.msra.mxu1 %v1426_v51  ;;  %v1423_v39 = vld [vmem:[%s4549_s8 + $0x8] sm:$0xff]  ;;  %v1884_v34 = vmul.f32 0.5, %v4578_v52  ;;  %v4585_v52 = vld [vmem:[#allocation5_spill] sm:$0xff] }
 0x299   :  { %1494 = vmatprep.subr.mxu1 %v1425_v37  ;;  %v4579_v37 = vsub.f32 %v3583_v63, %v3592_v7  ;;  %v4582_v63 = vsub.f32 %v3613_v3, %v3622_v47 }
 0x29a   :  { %1951 = vrot.lane.b32.xlu0 %v3422_v44, %s2749_s6  ;;  %1495 = vmatpush1.msra.mxu1 %v1424_v54 }
 0x29b   :  { %1496 = vmatprep.subr.mxu1 %v1423_v39  ;;  %v1883_v54 = vmul.f32 0.5, %v4579_v37  ;;  %v1885_v7 = vmul.f32 0.5, %v4582_v63 }
 0x29c   :  { %1957 = vrot.lane.b32.xlu1 %v3426_v48, %s2749_s6  ;;  %1497 = vmatpush1.msra.mxu1 %v1422_v61  ;;  %v4580_v61 = vmov 0.0  }
 0x29e   :  { %1955 = vrot.lane.b32.xlu0 %v3430_v2, %s2749_s6 }
 0x2a0   :  { %1961 = vrot.lane.b32.xlu1 %v3442_v12, %s2749_s6 }
 0x2a2   :  { %1959 = vrot.lane.b32.xlu0 %v3447_v16, %s2749_s6 }
 0x2a4   :  { %1965 = vrot.lane.b32.xlu1 %v3460_v25, %s2749_s6 }
 0x2a6   :  { %1963 = vrot.lane.b32.xlu0 %v3465_v30, %s2749_s6 }
 0x2a8   :  { %1969 = vrot.lane.b32.xlu1 %v3478_v42, %s2749_s6 }
 0x2aa   :  { %1967 = vrot.lane.b32.xlu0 %v3483_v49, %s2749_s6 }
 0x2ac   :  { %1973 = vrot.lane.b32.xlu1 %v3496_v9, %s2749_s6 }
 0x2ae   :  { %1971 = vrot.lane.b32.xlu0 %v3501_v15, %s2749_s6 }
 0x2b0   :  { %1977 = vrot.lane.b32.xlu1 %v3514_v26, %s2749_s6 }
 0x2b2   :  { %1975 = vrot.lane.b32.xlu0 %v3519_v33, %s2749_s6 }
 0x2b4   :  { %1981 = vrot.lane.b32.xlu1 %v3554_v18, %s2749_s6 }
 0x2b6   :  { %1979 = vrot.lane.b32.xlu0 %v3558_v21, %s2749_s6 }
 0x2b8   :  { %1985 = vrot.lane.b32.xlu1 %v3562_v24, %s2749_s6 }
 0x2ba   :  { %1983 = vrot.lane.b32.xlu0 %v3566_v29, %s2749_s6 }
 0x2bc   :  { %1989 = vrot.lane.b32.xlu1 %v3569_v35, %s2749_s6 }
 0x2be   :  { %1987 = vrot.lane.b32.xlu0 %v3579_v45, %s2749_s6 }
 0x2c0   :  { %1993 = vrot.lane.b32.xlu1 %v3589_v5, %s2749_s6 }
 0x2c2   :  { %1991 = vrot.lane.b32.xlu0 %v3609_v27, %s2749_s6 }
 0x2c4   :  { %1997 = vrot.lane.b32.xlu1 %v3619_v43, %s2749_s6 }
 0x2c6   :  { %1995 = vrot.lane.b32.xlu0 %v3639_v23, %s2749_s6 }
 0x2c8   :  { %2001 = vrot.lane.b32.xlu1 %v3649_v46, %s2749_s6 }
 0x2ca   :  { %1999 = vrot.lane.b32.xlu0 %v3669_v20, %s2749_s6  ;;  %v967_v44 = vpop.permute.xlu1 %966 }
 0x2cb   :  { %v3955_v12 = vadd.f32 %v967_v44, %v3554_v18  ;;  %v4581_v44 = vsub.f32 %v3604_v22, %v3615_v38 }
 0x2cc   :  { %2005 = vrot.lane.b32.xlu1 %v3679_v62, %s2749_s6  ;;  %v965_v48 = vpop.permute.xlu0 %964 }
 0x2cd   :  { %v3952_v2 = vadd.f32 %v965_v48, %v3558_v21  ;;  %v1886_v48 = vmul.f32 0.5, %v4581_v44 }
 0x2ce   :  { %2003 = vrot.lane.b32.xlu0 %v3699_v1, %s2749_s6 }
 0x2cf   :  { %2525 = vmatprep.mubr.msk.f32.mxu1 %vm1068_vm0, %v3952_v2 }
 0x2d0   :  { %2009 = vrot.lane.b32.xlu1 %v3709_v10, %s2749_s6  ;;  %2526 = vmatmul.mubr.msk.f32.gmra.mxu1 %vm1068_vm0, %v3955_v12 }
 0x2d2   :  { %2007 = vrot.lane.b32.xlu0 %v3729_v8, %s2749_s6  ;;  %v971_v16 = vpop.permute.xlu1 %970 }
 0x2d3   :  { %v3971_v42 = vadd.f32 %v971_v16, %v3562_v24 }
 0x2d4   :  { %v969_v25 = vpop.permute.xlu0 %968 }
 0x2d5   :  { %v3968_v30 = vadd.f32 %v969_v25, %v3566_v29 }
 0x2d7   :  { %2528 = vmatprep.mubr.msk.f32.mxu1 %vm1068_vm0, %v3968_v30 }
 0x2d8   :  { %2529 = vmatmul.mubr.msk.f32.gmra.mxu1 %vm1068_vm0, %v3971_v42 }
 0x2da   :  { %v975_v49 = vpop.permute.xlu1 %974 }
 0x2db   :  { %v3981_v26 = vadd.f32 %v975_v49, %v3569_v35 }
 0x2dc   :  { %v973_v9 = vpop.permute.xlu0 %972 }
 0x2dd   :  { %v3978_v15 = vadd.f32 %v973_v9, %v3579_v45 }
 0x2df   :  { %2531 = vmatprep.mubr.msk.f32.mxu1 %vm1068_vm0, %v3978_v15 }
 0x2e0   :  { %2532 = vmatmul.mubr.msk.f32.gmra.mxu1 %vm1068_vm0, %v3981_v26 }
 0x2e2   :  { %v979_v33 = vpop.permute.xlu1 %978 }
 0x2e3   :  { %v3991_v24 = vadd.f32 %v979_v33, %v3589_v5 }
 0x2e4   :  { %v977_v18 = vpop.permute.xlu0 %976 }
 0x2e5   :  { %v3988_v21 = vadd.f32 %v977_v18, %v3609_v27 }
 0x2e7   :  { %2534 = vmatprep.mubr.msk.f32.mxu1 %vm1068_vm0, %v3988_v21 }
 0x2e8   :  { %2535 = vmatmul.mubr.msk.f32.gmra.mxu1 %vm1068_vm0, %v3991_v24 }
 0x2ea   :  { %v983_v29 = vpop.permute.xlu1 %982 }
 0x2eb   :  { %v4001_v40 = vadd.f32 %v983_v29, %v3619_v43  ;;  %v4583_v29 = vsub.f32 %v3634_v19, %v3645_v53  ;;  %v4588_v19 = vld [vmem:[#allocation6_spill] sm:$0xff]  ;;  %v4589_v53 = vld [vmem:[#allocation8_spill] sm:$0xff] }
 0x2ec   :  { %v981_v35 = vpop.permute.xlu0 %980  ;;  %v4590_v37 = vsub.f32 %v4588_v19, %v4589_v53 }
 0x2ed   :  { %v3998_v45 = vadd.f32 %v981_v35, %v3639_v23  ;;  %v1888_v35 = vmul.f32 0.5, %v4583_v29 }
 0x2ef   :  { %2537 = vmatprep.mubr.msk.f32.mxu1 %vm1068_vm0, %v3998_v45 }
 0x2f0   :  { %2538 = vmatmul.mubr.msk.f32.gmra.mxu1 %vm1068_vm0, %v4001_v40 }
 0x2f2   :  { %v987_v5 = vpop.permute.xlu1 %986 }
 0x2f3   :  { %v4011_v60 = vadd.f32 %v987_v5, %v3649_v46  ;;  %v4584_v5 = vsub.f32 %v3643_v36, %v3652_v4 }
 0x2f4   :  { %v985_v27 = vpop.permute.xlu0 %984 }
 0x2f5   :  { %v4008_v17 = vadd.f32 %v985_v27, %v3669_v20  ;;  %v1887_v22 = vmul.f32 0.5, %v4584_v5 }
 0x2f7   :  { %2540 = vmatprep.mubr.msk.f32.mxu1 %vm1068_vm0, %v4008_v17 }
 0x2f8   :  { %2541 = vmatmul.mubr.msk.f32.gmra.mxu1 %vm1068_vm0, %v4011_v60 }
 0x2fa   :  { %v991_v43 = vpop.permute.xlu1 %990 }
 0x2fb   :  { %v4021_v32 = vadd.f32 %v991_v43, %v3679_v62 }
 0x2fc   :  { %v989_v23 = vpop.permute.xlu0 %988 }
 0x2fd   :  { %v4018_v59 = vadd.f32 %v989_v23, %v3699_v1 }
 0x2ff   :  { %2543 = vmatprep.mubr.msk.f32.mxu1 %vm1068_vm0, %v4018_v59 }
 0x300   :  { %2544 = vmatmul.mubr.msk.f32.gmra.mxu1 %vm1068_vm0, %v4021_v32 }
 0x302   :  { %v995_v46 = vpop.permute.xlu1 %994 }
 0x303   :  { %v4034_v1 = vadd.f32 %v995_v46, %v3709_v10 }
 0x304   :  { %v993_v20 = vpop.permute.xlu0 %992 }
 0x305   :  { %v4028_v28 = vadd.f32 %v993_v20, %v3729_v8 }
 0x306   :  { %v1950_v62 = vpop.permute.xlu1 %1949 }
 0x307   :  { %v2044_v51 = vadd.f32 %v1950_v62, %v1884_v34  ;;  %2546 = vmatprep.mubr.msk.f32.mxu1 %vm1068_vm0, %v4028_v28  ;;  %v4586_v34 = vld [vmem:[#allocation7_spill] sm:$0xff] }
 0x308   :  { %2547 = vmatmul.mubr.msk.f32.gmra.mxu1 %vm1068_vm0, %v4034_v1  ;;  %v1948_v8 = vpop.permute.xlu0 %1947  ;;  %v4587_v62 = vsub.f32 %v4585_v52, %v4586_v34 }
 0x309   :  { %v2043_v39 = vadd.f32 %v1948_v8, %v1883_v54  ;;  %1530 = vmatprep.mubr.f32.mxu1 %v4580_v61  ;;  %v2076_v0 = vsel %vm1068_vm0, %v2044_v51, 0.0  ;;  %v1889_v54 = vmul.f32 0.5, %v4590_v37 }
 0x30a   :  { %v1954_v41 = vpop.permute.xlu1 %1953  ;;  %v1890_v51 = vmul.f32 0.5, %v4587_v62 }
 0x30b   :  { %v2075_v10 = vsel %vm1068_vm0, %v2043_v39, 0.0  ;;  %v2046_v49 = vadd.f32 %v1954_v41, %v1886_v48  ;;  %v4591_v48 = vsub.f32 %v3694_v55, %v3705_v6 }
 0x30c   :  { %v2077_v16 = vadd.f32 %v2076_v0, %v2075_v10  ;;  %v1952_v25 = vpop.permute.xlu0 %1951 }
 0x30d   :  { %v2045_v9 = vadd.f32 %v1952_v25, %v1885_v7  ;;  %v2080_v3 = vsel %vm1068_vm0, %v2046_v49, 0.0  ;;  %v1892_v63 = vmul.f32 0.5, %v4591_v48  ;;  %v4600_v48 = vld [vmem:[#allocation15_spill] sm:$0xff] }
 0x30e   :  { %v1958_v33 = vpop.permute.xlu1 %1957 }
 0x30f   :  { %v2078_v18 = vsel %vm1068_vm0, %v2045_v9, 0.0  ;;  %v2048_v47 = vadd.f32 %v1958_v33, %v1888_v35  ;;  %v4079_v35 = vld [vmem:[%s4548_s7] ss:$0 sm:$0xff] }
 0x310   :  { %v2079_v38 = vadd.f32 %v2078_v18, %v2077_v16  ;;  %v1956_v27 = vpop.permute.xlu0 %1955  ;;  %v4592_v16 = vld [vmem:[#allocation9_spill] sm:$0xff] }
 0x311   :  { %v2047_v43 = vadd.f32 %v1956_v27, %v1887_v22  ;;  %v2084_v8 = vsel %vm1068_vm0, %v2048_v47, 0.0  ;;  %v4593_v25 = vsub.f32 %v3703_v13, %v4592_v16  ;;  %v4594_v13 = vld [vmem:[#allocation11_spill] sm:$0xff] }
 0x312   :  { %v2081_v23 = vadd.f32 %v2080_v3, %v2079_v38  ;;  %v1962_v46 = vpop.permute.xlu1 %1961  ;;  %v4595_v3 = vsub.f32 %v3724_v57, %v4594_v13  ;;  %v2658_v57 = vld [vmem:[%s4542_s1 + $0x80] sm:$0xff] }
 0x313   :  { %v2082_v20 = vsel %vm1068_vm0, %v2047_v43, 0.0  ;;  %v2050_v39 = vadd.f32 %v1962_v46, %v1890_v51  ;;  %v1891_v49 = vmul.f32 0.5, %v4593_v25  ;;  %v4596_v43 = vld [vmem:[#allocation10_spill] sm:$0xff] }
 0x314   :  { %v2083_v36 = vadd.f32 %v2082_v20, %v2081_v23  ;;  %v1960_v4 = vpop.permute.xlu0 %1959  ;;  %v1894_v47 = vmul.f32 0.5, %v4595_v3  ;;  %v4597_v23 = vld [vmem:[#allocation12_spill] sm:$0xff]  ;;  %v4602_v25 = vld [vmem:[#allocation14_spill] sm:$0xff]  ;;  %v1898_v3 = vmul.f32 0.5, %v1866_v14  ;;  %v1808_v14 = vmul.f32 %v2661_v58, %v2661_v58 }
 0x315   :  { %v2049_v41 = vadd.f32 %v1960_v4, %v1889_v54  ;;  %v2088_v18 = vsel %vm1068_vm0, %v2050_v39, 0.0  ;;  %v4598_v46 = vsub.f32 %v4596_v43, %v4597_v23  ;;  %v2657_v54 = vld [vmem:[%s4542_s1 + $0x88] sm:$0xff]  ;;  %v1803_v4 = vmul.f32 %v2658_v57, %v2658_v57 }
 0x316   :  { %v2085_v0 = vadd.f32 %v2084_v8, %v2083_v36  ;;  %v1966_v10 = vpop.permute.xlu1 %1965  ;;  %v1804_v36 = vmul.f32 %v2657_v54, %v2657_v54  ;;  %v1836_v8 = vmul.f32 %v3955_v12, %v3955_v12  ;;  %v2659_v12 = vld [vmem:[%s4542_s1 + $0x98] sm:$0xff] }
 0x317   :  { %v2086_v44 = vsel %vm1068_vm0, %v2049_v41, 0.0  ;;  %v2503_v7 = vpop.f32.mrf.mxu1  ;;  %v2052_v29 = vadd.f32 %v1966_v10, %v1892_v63  ;;  %v1893_v20 = vmul.f32 0.5, %v4598_v46  ;;  %v1897_v46 = vmul.f32 0.5, %v1865_v31 }
 0x318   :  { %v2087_v9 = vadd.f32 %v2086_v44, %v2085_v0  ;;  %v1964_v33 = vpop.permute.xlu0 %1963  ;;  %v1237_v52 = vadd.f32 %v2503_v7, %v4079_v35  ;;  %v1835_v0 = vmul.f32 %v3952_v2, %v3952_v2  ;;  %v4599_v44 = vld [vmem:[#allocation13_spill] sm:$0xff]  ;;  %v2660_v2 = vld [vmem:[%s4542_s1 + $0x90] sm:$0xff] }
 0x319   :  { %v2051_v5 = vadd.f32 %v1964_v33, %v1891_v49  ;;  %v1231_v22 = vpop.f32.mrf.mxu1  ;;  %v2092_v19 = vsel %vm1068_vm0, %v2052_v29, 0.0  ;;  %v4601_v63 = vsub.f32 %v4599_v44, %v4600_v48  ;;  %v4603_v49 = vld [vmem:[#allocation16_spill] sm:$0xff]  ;;  %v4117_v29 = vmul.f32 %v2660_v2, %v2660_v2 }
 0x31a   :  { %v2089_v38 = vadd.f32 %v2088_v18, %v2087_v9  ;;  %v1232_v6 = vadd.f32 %v4079_v35, %v1231_v22  ;;  %v1970_v55 = vpop.permute.xlu1 %1969  ;;  %v4604_v9 = vsub.f32 %v4602_v25, %v4603_v49  ;;  %v4112_v18 = vmul.f32 %v2659_v12, %v2659_v12  ;;  %v2663_v44 = vld [vmem:[%s4542_s1 + $0xb8] sm:$0xff] }
 0x31b   :  { %v2090_v27 = vsel %vm1068_vm0, %v2051_v5, 0.0  ;;  %v2054_v53 = vadd.f32 %v1970_v55, %v1894_v47  ;;  %v1896_v7 = vmul.f32 0.5, %v4601_v63  ;;  %v1391_v5 = vmax.f32 %v1237_v52, 0.0 }
 0x31c   :  { %v2091_v34 = vadd.f32 %v2090_v27, %v2089_v38  ;;  %v1390_v62 = vmax.f32 %v1232_v6, 0.0  ;;  %v1968_v51 = vpop.permute.xlu0 %1967  ;;  %v1895_v33 = vmul.f32 0.5, %v4604_v9  ;;  %v1838_v52 = vmul.f32 %v3971_v42, %v3971_v42 }
 0x31d   :  { %v2053_v37 = vadd.f32 %v1968_v51, %v1893_v20  ;;  %v2096_v6 = vsel %vm1068_vm0, %v2054_v53, 0.0  ;;  %v1868_v20 = vsub.f32 %v1804_v36, %v1836_v8  ;;  %v1867_v56 = vsub.f32 %v1803_v4, %v1835_v0 }
 0x31e   :  { %v2093_v39 = vadd.f32 %v2092_v19, %v2091_v34  ;;  %v1974_v41 = vpop.permute.xlu1 %1973  ;;  %1531 = vmatmul.mubr.f32.vlgmr.msra.gmra.mxu1 %v1390_v62  ;;  %v1837_v34 = vmul.f32 %v3968_v30, %v3968_v30  ;;  %v1840_v42 = vmul.f32 %v3981_v26, %v3981_v26  ;;  %v1839_v36 = vmul.f32 %v3978_v15, %v3978_v15  ;;  %v2664_v15 = vld [vmem:[%s4542_s1 + $0xb0] sm:$0xff] }
 0x31f   :  { %v2094_v10 = vsel %vm1068_vm0, %v2053_v37, 0.0  ;;  %v2506_v16 = vpop.f32.mrf.mxu1  ;;  %1536 = vmatprep.mubr.f32.mxu1 %v4580_v61  ;;  %v2056_v55 = vadd.f32 %v1974_v41, %v1896_v7  ;;  %v2662_v37 = vld [vmem:[%s4542_s1 + $0xa0] sm:$0xff]  ;;  %v1900_v4 = vmul.f32 0.5, %v1868_v20  ;;  %v1899_v26 = vmul.f32 0.5, %v1867_v56 }
 0x320   :  { %v2095_v22 = vadd.f32 %v2094_v10, %v2093_v39  ;;  %v1972_v38 = vpop.permute.xlu0 %1971  ;;  %v1247_v50 = vadd.f32 %v2506_v16, %v4079_v35  ;;  %v1807_v54 = vmul.f32 %v2662_v37, %v2662_v37  ;;  %v1870_v0 = vsub.f32 %v4112_v18, %v1838_v52 }
 0x321   :  { %v2055_v27 = vadd.f32 %v1972_v38, %v1895_v33  ;;  %v1241_v13 = vpop.f32.mrf.mxu1  ;;  %v2100_v30 = vsel %vm1068_vm0, %v2056_v55, 0.0  ;;  %v1869_v10 = vsub.f32 %v4117_v29, %v1837_v34  ;;  %v1810_v48 = vmul.f32 %v2663_v44, %v2663_v44 }
 0x322   :  { %v2097_v47 = vadd.f32 %v2096_v6, %v2095_v22  ;;  %v1242_v43 = vadd.f32 %v4079_v35, %v1241_v13  ;;  %v1978_v23 = vpop.permute.xlu1 %1977  ;;  %1537 = vmatmul.mubr.f32.gmra.mxu1 %v1391_v5  ;;  %v1809_v63 = vmul.f32 %v2664_v15, %v2664_v15  ;;  %v1393_v7 = vmax.f32 %v1247_v50, 0.0 }
 0x323   :  { %v2098_v62 = vsel %vm1068_vm0, %v2055_v27, 0.0  ;;  %1542 = vmatprep.mubr.f32.mxu1 %v4580_v61  ;;  %v2058_v19 = vadd.f32 %v1978_v23, %v1898_v3  ;;  %v1872_v18 = vsub.f32 %v1808_v14, %v1840_v42  ;;  %v1842_v2 = vmul.f32 %v3991_v24, %v3991_v24  ;;  %v2665_v3 = vld [vmem:[%s4542_s1 + $0xc8] sm:$0xff] }
 0x324   :  { %v2099_v11 = vadd.f32 %v2098_v62, %v2097_v47  ;;  %v1392_v31 = vmax.f32 %v1242_v43, 0.0  ;;  %v1976_v51 = vpop.permute.xlu0 %1975  ;;  %v1871_v38 = vsub.f32 %v1807_v54, %v1839_v36  ;;  %v1841_v6 = vmul.f32 %v3988_v21, %v3988_v21  ;;  %v2666_v21 = vld [vmem:[%s4542_s1 + $0xc0] sm:$0xff]  ;;  %v2668_v54 = vld [vmem:[%s4542_s1 + $0xd0] sm:$0xff] }
 0x325   :  { %v2057_v53 = vadd.f32 %v1976_v51, %v1897_v46  ;;  %v2104_v49 = vsel %vm1068_vm0, %v2058_v19, 0.0  ;;  %v1902_v27 = vmul.f32 0.5, %v1870_v0  ;;  %v1901_v13 = vmul.f32 0.5, %v1869_v10 }
 0x326   :  { %v2101_v57 = vadd.f32 %v2100_v30, %v2099_v11  ;;  %v1982_v8 = vpop.permute.xlu1 %1981  ;;  %1543 = vmatmul.mubr.f32.gmra.mxu1 %v1392_v31  ;;  %v4166_v24 = vmul.f32 %v2665_v3, %v2665_v3  ;;  %v1811_v20 = vmul.f32 %v2666_v21, %v2666_v21  ;;  %v1904_v58 = vmul.f32 0.5, %v1872_v18 }
 0x327   :  { %v2102_v39 = vsel %vm1068_vm0, %v2057_v53, 0.0  ;;  %v2509_v41 = vpop.f32.mrf.mxu1  ;;  %1548 = vmatprep.mubr.f32.mxu1 %v4580_v61  ;;  %v2060_v9 = vadd.f32 %v1982_v8, %v1900_v4  ;;  %v1903_v50 = vmul.f32 0.5, %v1871_v38  ;;  %v1874_v11 = vsub.f32 %v1810_v48, %v1842_v2  ;;  %v2667_v53 = vld [vmem:[%s4542_s1 + $0xd8] sm:$0xff] }
 0x328   :  { %v2103_v16 = vadd.f32 %v2102_v39, %v2101_v57  ;;  %v1980_v25 = vpop.permute.xlu0 %1979  ;;  %v1257_v47 = vadd.f32 %v2509_v41, %v4079_v35  ;;  %v1844_v31 = vmul.f32 %v4001_v40, %v4001_v40  ;;  %v1843_v51 = vmul.f32 %v3998_v45, %v3998_v45 }
 0x329   :  { %v2059_v33 = vadd.f32 %v1980_v25, %v1899_v26  ;;  %v1251_v12 = vpop.f32.mrf.mxu1  ;;  %v2108_v52 = vsel %vm1068_vm0, %v2060_v9, 0.0  ;;  %v1873_v19 = vsub.f32 %v1809_v63, %v1841_v6  ;;  %v1814_v37 = vmul.f32 %v2667_v53, %v2667_v53  ;;  %v2669_v25 = vld [vmem:[%s4542_s1 + $0xe8] sm:$0xff] }
 0x32a   :  { %v2105_v29 = vadd.f32 %v2104_v49, %v2103_v16  ;;  %v1252_v5 = vadd.f32 %v4079_v35, %v1251_v12  ;;  %v1986_v22 = vpop.permute.xlu1 %1985  ;;  %1549 = vmatmul.mubr.f32.gmra.mxu1 %v1393_v7  ;;  %v1813_v36 = vmul.f32 %v2668_v54, %v2668_v54  ;;  %v1395_v40 = vmax.f32 %v1257_v47, 0.0 }
 0x32b   :  { %v2106_v55 = vsel %vm1068_vm0, %v2059_v33, 0.0  ;;  %1554 = vmatprep.mubr.f32.mxu1 %v4580_v61  ;;  %v2062_v34 = vadd.f32 %v1986_v22, %v1902_v27  ;;  %v1846_v45 = vmul.f32 %v4011_v60, %v4011_v60  ;;  %v1845_v0 = vmul.f32 %v4008_v17, %v4008_v17  ;;  %v2670_v22 = vld [vmem:[%s4542_s1 + $0xe0] sm:$0xff] }
 0x32c   :  { %v2107_v43 = vadd.f32 %v2106_v55, %v2105_v29  ;;  %v1394_v23 = vmax.f32 %v1252_v5, 0.0  ;;  %v1984_v46 = vpop.permute.xlu0 %1983  ;;  %v1906_v48 = vmul.f32 0.5, %v1874_v11  ;;  %v1905_v7 = vmul.f32 0.5, %v1873_v19 }
 0x32d   :  { %v2061_v62 = vadd.f32 %v1984_v46, %v1901_v13  ;;  %v2112_v8 = vsel %vm1068_vm0, %v2062_v34, 0.0  ;;  %v1876_v60 = vsub.f32 %v4166_v24, %v1844_v31  ;;  %v1875_v16 = vsub.f32 %v1811_v20, %v1843_v51  ;;  %v2671_v46 = vld [vmem:[%s4542_s1 + $0xf8] sm:$0xff] }
 0x32e   :  { %v2109_v56 = vadd.f32 %v2108_v52, %v2107_v43  ;;  %v1990_v14 = vpop.permute.xlu1 %1989  ;;  %1555 = vmatmul.mubr.f32.gmra.mxu1 %v1394_v23  ;;  %v1816_v49 = vmul.f32 %v2669_v25, %v2669_v25  ;;  %v1878_v5 = vsub.f32 %v1814_v37, %v1846_v45  ;;  %v1815_v38 = vmul.f32 %v2670_v22, %v2670_v22 }
 0x32f   :  { %v2110_v42 = vsel %vm1068_vm0, %v2061_v62, 0.0  ;;  %v2512_v30 = vpop.f32.mrf.mxu1  ;;  %1560 = vmatprep.mubr.f32.mxu1 %v4580_v61  ;;  %v2064_v39 = vadd.f32 %v1990_v14, %v1904_v58  ;;  %v1848_v6 = vmul.f32 %v4021_v32, %v4021_v32  ;;  %v1877_v13 = vsub.f32 %v1813_v36, %v1845_v0  ;;  %v2672_v32 = vld [vmem:[%s4542_s1 + $0xf0] sm:$0xff] }
 0x330   :  { %v2111_v57 = vadd.f32 %v2110_v42, %v2109_v56  ;;  %v1988_v4 = vpop.permute.xlu0 %1987  ;;  %v1267_v17 = vadd.f32 %v2512_v30, %v4079_v35  ;;  %v1847_v3 = vmul.f32 %v4018_v59, %v4018_v59  ;;  %v1908_v47 = vmul.f32 0.5, %v1876_v60 }
 0x331   :  { %v2063_v41 = vadd.f32 %v1988_v4, %v1903_v50  ;;  %v1261_v26 = vpop.f32.mrf.mxu1  ;;  %v2116_v18 = vsel %vm1068_vm0, %v2064_v39, 0.0  ;;  %v1907_v23 = vmul.f32 0.5, %v1875_v16  ;;  %v1818_v21 = vmul.f32 %v2671_v46, %v2671_v46 }
 0x332   :  { %v2113_v10 = vadd.f32 %v2112_v8, %v2111_v57  ;;  %v1262_v44 = vadd.f32 %v4079_v35, %v1261_v26  ;;  %v1994_v15 = vpop.permute.xlu1 %1993  ;;  %1561 = vmatmul.mubr.f32.gmra.mxu1 %v1395_v40  ;;  %v1817_v20 = vmul.f32 %v2672_v32, %v2672_v32  ;;  %v1397_v52 = vmax.f32 %v1267_v17, 0.0 }
 0x333   :  { %v2114_v63 = vsel %vm1068_vm0, %v2063_v41, 0.0  ;;  %1566 = vmatprep.mubr.f32.mxu1 %v4580_v61  ;;  %v2066_v2 = vadd.f32 %v1994_v15, %v1906_v48  ;;  %v1910_v50 = vmul.f32 0.5, %v1878_v5  ;;  %v1909_v42 = vmul.f32 0.5, %v1877_v13 }
 0x334   :  { %v2115_v9 = vadd.f32 %v2114_v63, %v2113_v10  ;;  %v1396_v33 = vmax.f32 %v1262_v44, 0.0  ;;  %v1992_v12 = vpop.permute.xlu0 %1991  ;;  %v1880_v30 = vsub.f32 %v1816_v49, %v1848_v6  ;;  %v1850_v19 = vmul.f32 %v4034_v1, %v4034_v1 }
 0x335   :  { %v2065_v29 = vadd.f32 %v1992_v12, %v1905_v7  ;;  %v2120_v62 = vsel %vm1068_vm0, %v2066_v2, 0.0  ;;  %v1849_v53 = vmul.f32 %v4028_v28, %v4028_v28  ;;  %v1879_v54 = vsub.f32 %v1815_v38, %v1847_v3 }
 0x336   :  { %v2117_v55 = vadd.f32 %v2116_v18, %v2115_v9  ;;  %v1998_v27 = vpop.permute.xlu1 %1997  ;;  %1567 = vmatmul.mubr.f32.gmra.mxu1 %v1396_v33  ;;  %v1912_v26 = vmul.f32 0.5, %v1880_v30  ;;  %v1882_v44 = vsub.f32 %v1818_v21, %v1850_v19 }
 0x337   :  { %v2118_v24 = vsel %vm1068_vm0, %v2065_v29, 0.0  ;;  %v2515_v43 = vpop.f32.mrf.mxu1  ;;  %1572 = vmatprep.mubr.f32.mxu1 %v4580_v61  ;;  %v2068_v56 = vadd.f32 %v1998_v27, %v1908_v47  ;;  %v1911_v10 = vmul.f32 0.5, %v1879_v54  ;;  %v1881_v48 = vsub.f32 %v1817_v20, %v1849_v53 }
 0x338   :  { %v2119_v34 = vadd.f32 %v2118_v24, %v2117_v55  ;;  %v1996_v59 = vpop.permute.xlu0 %1995  ;;  %v1277_v36 = vadd.f32 %v2515_v43, %v4079_v35  ;;  %v1914_v18 = vmul.f32 0.5, %v1882_v44 }
 0x339   :  { %v2067_v58 = vadd.f32 %v1996_v59, %v1907_v23  ;;  %v1271_v14 = vpop.f32.mrf.mxu1  ;;  %v2124_v45 = vsel %vm1068_vm0, %v2068_v56, 0.0  ;;  %v1913_v2 = vmul.f32 0.5, %v1881_v48 }
 0x33a   :  { %v2121_v11 = vadd.f32 %v2120_v62, %v2119_v34  ;;  %v1272_v31 = vadd.f32 %v4079_v35, %v1271_v14  ;;  %v2002_v51 = vpop.permute.xlu1 %2001  ;;  %1573 = vmatmul.mubr.f32.gmra.mxu1 %v1397_v52  ;;  %v1399_v15 = vmax.f32 %v1277_v36, 0.0 }
 0x33b   :  { %v2122_v37 = vsel %vm1068_vm0, %v2067_v58, 0.0  ;;  %1578 = vmatprep.mubr.f32.mxu1 %v4580_v61  ;;  %v2070_v8 = vadd.f32 %v2002_v51, %v1910_v50 }
 0x33c   :  { %v2123_v40 = vadd.f32 %v2122_v37, %v2121_v11  ;;  %v1398_v57 = vmax.f32 %v1272_v31, 0.0  ;;  %v2000_v4 = vpop.permute.xlu0 %1999 }
 0x33d   :  { %v2069_v39 = vadd.f32 %v2000_v4, %v1909_v42  ;;  %v2128_v60 = vsel %vm1068_vm0, %v2070_v8, 0.0 }
 0x33e   :  { %v2125_v41 = vadd.f32 %v2124_v45, %v2123_v40  ;;  %v2006_v1 = vpop.permute.xlu1 %2005  ;;  %1579 = vmatmul.mubr.f32.gmra.mxu1 %v1398_v57 }
 0x33f   :  { %v2126_v28 = vsel %vm1068_vm0, %v2069_v39, 0.0  ;;  %v2518_v0 = vpop.f32.mrf.mxu1  ;;  %1584 = vmatprep.mubr.f32.mxu1 %v4580_v61  ;;  %v2072_v16 = vadd.f32 %v2006_v1, %v1912_v26 }
 0x340   :  { %v2127_v63 = vadd.f32 %v2126_v28, %v2125_v41  ;;  %v2004_v7 = vpop.permute.xlu0 %2003  ;;  %v1287_v29 = vadd.f32 %v2518_v0, %v4079_v35 }
 0x341   :  { %v2071_v25 = vadd.f32 %v2004_v7, %v1911_v10  ;;  %v1281_v49 = vpop.f32.mrf.mxu1  ;;  %v2132_v6 = vsel %vm1068_vm0, %v2072_v16, 0.0 }
 0x342   :  { %v2129_v17 = vadd.f32 %v2128_v60, %v2127_v63  ;;  %v1282_v9 = vadd.f32 %v4079_v35, %v1281_v49  ;;  %v2010_v33 = vpop.permute.xlu1 %2009  ;;  %1585 = vmatmul.mubr.f32.gmra.mxu1 %v1399_v15  ;;  %v1401_v47 = vmax.f32 %v1287_v29, 0.0 }
 0x343   :  { %v2130_v12 = vsel %vm1068_vm0, %v2071_v25, 0.0  ;;  %1590 = vmatprep.mubr.f32.mxu1 %v4580_v61  ;;  %v2074_v55 = vadd.f32 %v2010_v33, %v1914_v18 }
 0x344   :  { %v2131_v5 = vadd.f32 %v2130_v12, %v2129_v17  ;;  %v1400_v22 = vmax.f32 %v1282_v9, 0.0  ;;  %v2008_v38 = vpop.permute.xlu0 %2007 }
 0x345   :  { %v2073_v27 = vadd.f32 %v2008_v38, %v1913_v2  ;;  %v2136_v46 = vsel %vm1068_vm0, %v2074_v55, 0.0 }
 0x346   :  { %1591 = vmatmul.mubr.f32.gmra.mxu1 %v1400_v22  ;;  %v2133_v13 = vadd.f32 %v2132_v6, %v2131_v5 }
 0x347   :  { %v2134_v3 = vsel %vm1068_vm0, %v2073_v27, 0.0  ;;  %v2521_v24 = vpop.f32.mrf.mxu1  ;;  %1596 = vmatprep.mubr.f32.mxu1 %v4580_v61 }
 0x348   :  { %v2135_v43 = vadd.f32 %v2134_v3, %v2133_v13  ;;  %v1297_v20 = vadd.f32 %v2521_v24, %v4079_v35 }
 0x349   :  { %v1291_v23 = vpop.f32.mrf.mxu1 }
 0x34a   :  { %v1292_v21 = vadd.f32 %v4079_v35, %v1291_v23  ;;  %1597 = vmatmul.mubr.f32.gmra.mxu1 %v1401_v47  ;;  %v2137_v32 = vadd.f32 %v2136_v46, %v2135_v43  ;;  %v1403_v59 = vmax.f32 %v1297_v20, 0.0  ;;  %v1456_v47 = vlaneseq }
 0x34b   :  { %1602 = vmatprep.mubr.f32.mxu1 %v4580_v61 }
 0x34c   :  { %v1402_v52 = vmax.f32 %v1292_v21, 0.0  ;;  %2138 = vadd.xlane.f32.xlu0 %v2137_v32  ;;  %v1457_v23 = vshrl.u32 %v1456_v47, 7  ;;  %v2681_v47 = vld [vmem:[%s4541_s0 + $0x40] sm:$0xff] }
 0x34e   :  { %1603 = vmatmul.mubr.f32.gmra.mxu1 %v1402_v52  ;;  %v1458_v32 = vsub.s32 0, %v1457_v23  ;;  %v1454_v52 = vld [vmem:[%s4550_s9] sm:$0x3] }
 0x34f   :  { %v2524_v34 = vpop.f32.mrf.mxu1  ;;  %1608 = vmatprep.mubr.f32.mxu1 %v4580_v61 }
 0x350   :  { %v1307_v58 = vadd.f32 %v2524_v34, %v4079_v35  ;;  %v1462_v34 = vsub.s32 1, %v1457_v23 }
 0x351   :  { %v1301_v62 = vpop.f32.mrf.mxu1 }
 0x352   :  { %v1302_v56 = vadd.f32 %v4079_v35, %v1301_v62  ;;  %1609 = vmatmul.mubr.f32.gmra.mxu1 %v1403_v59  ;;  %v1405_v50 = vmax.f32 %v1307_v58, 0.0  ;;  %v4278_v62 = vrot.slane %v1454_v52, %v1458_v32 }
 0x353   :  { %1614 = vmatprep.mubr.f32.mxu1 %v4580_v61 }
 0x354   :  { %v1404_v14 = vmax.f32 %v1302_v56, 0.0  ;;  %v4280_v56 = vrot.slane %v1454_v52, %v1462_v34 }
 0x356   :  { %1615 = vmatmul.mubr.f32.gmra.mxu1 %v1404_v14 }
 0x357   :  { %1620 = vmatprep.mubr.f32.mxu1 %v4580_v61 }
 0x35a   :  { %1621 = vmatmul.mubr.f32.gmra.mxu1 %v1405_v50 }
 0x35b   :  { %1626 = vmatprep.mubr.f32.mxu1 %v4580_v61 }
 0x390   :  { %v2527_v11 = vpop.f32.mrf.mxu1 }
 0x391   :  { %v1317_v42 = vadd.f32 %v2527_v11, %v4079_v35 }
 0x392   :  { %v1311_v31 = vpop.f32.mrf.mxu1 }
 0x393   :  { %v1312_v51 = vadd.f32 %v4079_v35, %v1311_v31  ;;  %v1407_v53 = vmax.f32 %v1317_v42, 0.0  ;;  %v2673_v31 = vld [vmem:[%s4541_s0] sm:$0xff] }
 0x395   :  { %v1406_v30 = vmax.f32 %v1312_v51, 0.0 }
 0x397   :  { %1627 = vmatmul.mubr.f32.gmra.mxu1 %v1406_v30 }
 0x398   :  { %v2530_v19 = vpop.f32.mrf.mxu1  ;;  %1632 = vmatprep.mubr.f32.mxu1 %v4580_v61 }
 0x399   :  { %v1327_v36 = vadd.f32 %v2530_v19, %v4079_v35  ;;  %v2674_v19 = vld [vmem:[%s4541_s0 + $0x8] sm:$0xff] }
 0x39a   :  { %v1321_v37 = vpop.f32.mrf.mxu1 }
 0x39b   :  { %v1322_v54 = vadd.f32 %v4079_v35, %v1321_v37  ;;  %1633 = vmatmul.mubr.f32.gmra.mxu1 %v1407_v53  ;;  %v1409_v4 = vmax.f32 %v1327_v36, 0.0 }
 0x39c   :  { %1638 = vmatprep.mubr.f32.mxu1 %v4580_v61 }
 0x39d   :  { %v1408_v40 = vmax.f32 %v1322_v54, 0.0 }
 0x39f   :  { %1639 = vmatmul.mubr.f32.gmra.mxu1 %v1408_v40 }
 0x3a0   :  { %v2533_v57 = vpop.f32.mrf.mxu1  ;;  %1644 = vmatprep.mubr.f32.mxu1 %v4580_v61 }
 0x3a1   :  { %v1337_v39 = vadd.f32 %v2533_v57, %v4079_v35  ;;  %v2675_v57 = vld [vmem:[%s4541_s0 + $0x10] sm:$0xff] }
 0x3a2   :  { %v1331_v45 = vpop.f32.mrf.mxu1 }
 0x3a3   :  { %v1332_v8 = vadd.f32 %v4079_v35, %v1331_v45  ;;  %1645 = vmatmul.mubr.f32.gmra.mxu1 %v1409_v4  ;;  %v1411_v1 = vmax.f32 %v1337_v39, 0.0 }
 0x3a4   :  { %1650 = vmatprep.mubr.f32.mxu1 %v4580_v61 }
 0x3a5   :  { %v1410_v41 = vmax.f32 %v1332_v8, 0.0 }
 0x3a7   :  { %1651 = vmatmul.mubr.f32.gmra.mxu1 %v1410_v41 }
 0x3a8   :  { %v2536_v26 = vpop.f32.mrf.mxu1  ;;  %1656 = vmatprep.mubr.f32.mxu1 %v4580_v61 }
 0x3a9   :  { %v1347_v10 = vadd.f32 %v2536_v26, %v4079_v35  ;;  %v2676_v26 = vld [vmem:[%s4541_s0 + $0x18] sm:$0xff] }
 0x3aa   :  { %v1341_v28 = vpop.f32.mrf.mxu1 }
 0x3ab   :  { %v1342_v0 = vadd.f32 %v4079_v35, %v1341_v28  ;;  %1657 = vmatmul.mubr.f32.gmra.mxu1 %v1411_v1  ;;  %v1413_v15 = vmax.f32 %v1347_v10, 0.0 }
 0x3ac   :  { %1662 = vmatprep.mubr.f32.mxu1 %v4580_v61 }
 0x3ad   :  { %v1412_v44 = vmax.f32 %v1342_v0, 0.0 }
 0x3af   :  { %1663 = vmatmul.mubr.f32.gmra.mxu1 %v1412_v44 }
 0x3b0   :  { %v2539_v48 = vpop.f32.mrf.mxu1  ;;  %1668 = vmatprep.mubr.f32.mxu1 %v4580_v61 }
 0x3b1   :  { %v1357_v60 = vadd.f32 %v2539_v48, %v4079_v35  ;;  %v2677_v48 = vld [vmem:[%s4541_s0 + $0x20] sm:$0xff] }
 0x3b2   :  { %v1351_v63 = vpop.f32.mrf.mxu1 }
 0x3b3   :  { %v1352_v7 = vadd.f32 %v4079_v35, %v1351_v63  ;;  %1669 = vmatmul.mubr.f32.gmra.mxu1 %v1413_v15  ;;  %v1415_v49 = vmax.f32 %v1357_v60, 0.0 }
 0x3b4   :  { %1674 = vmatprep.mubr.f32.mxu1 %v4580_v61 }
 0x3b5   :  { %v1414_v16 = vmax.f32 %v1352_v7, 0.0 }
 0x3b7   :  { %1675 = vmatmul.mubr.f32.gmra.mxu1 %v1414_v16 }
 0x3b8   :  { %v2542_v25 = vpop.f32.mrf.mxu1  ;;  %1680 = vmatprep.mubr.f32.mxu1 %v4580_v61 }
 0x3b9   :  { %v1367_v33 = vadd.f32 %v2542_v25, %v4079_v35  ;;  %v2678_v25 = vld [vmem:[%s4541_s0 + $0x28] sm:$0xff] }
 0x3ba   :  { %v1361_v17 = vpop.f32.mrf.mxu1 }
 0x3bb   :  { %v1362_v9 = vadd.f32 %v4079_v35, %v1361_v17  ;;  %1681 = vmatmul.mubr.f32.gmra.mxu1 %v1415_v49  ;;  %v1417_v2 = vmax.f32 %v1367_v33, 0.0 }
 0x3bc   :  { %1686 = vmatprep.mubr.f32.mxu1 %v4580_v61 }
 0x3bd   :  { %v1416_v12 = vmax.f32 %v1362_v9, 0.0 }
 0x3bf   :  { %1687 = vmatmul.mubr.f32.gmra.mxu1 %v1416_v12 }
 0x3c0   :  { %v2545_v18 = vpop.f32.mrf.mxu1  ;;  %1692 = vmatprep.mubr.f32.mxu1 %v4580_v61 }
 0x3c1   :  { %v1377_v22 = vadd.f32 %v2545_v18, %v4079_v35  ;;  %v2679_v18 = vld [vmem:[%s4541_s0 + $0x30] sm:$0xff] }
 0x3c2   :  { %v1371_v29 = vpop.f32.mrf.mxu1 }
 0x3c3   :  { %v1372_v5 = vadd.f32 %v4079_v35, %v1371_v29  ;;  %1693 = vmatmul.mubr.f32.gmra.mxu1 %v1417_v2  ;;  %v1419_v55 = vmax.f32 %v1377_v22, 0.0 }
 0x3c4   :  { %1698 = vmatprep.mubr.f32.mxu1 %v4580_v61 }
 0x3c5   :  { %v1418_v38 = vmax.f32 %v1372_v5, 0.0 }
 0x3c7   :  { %1699 = vmatmul.mubr.f32.gmra.mxu1 %v1418_v38 }
 0x3c8   :  { %v2548_v6 = vpop.f32.mrf.mxu1  ;;  %1704 = vmatprep.mubr.f32.mxu1 %v4580_v61 }
 0x3c9   :  { %v1387_v3 = vadd.f32 %v2548_v6, %v4079_v35  ;;  %v2680_v6 = vld [vmem:[%s4541_s0 + $0x38] sm:$0xff] }
 0x3ca   :  { %v1381_v27 = vpop.f32.mrf.mxu1 }
 0x3cb   :  { %v1382_v13 = vadd.f32 %v4079_v35, %v1381_v27  ;;  %1705 = vmatmul.mubr.f32.gmra.mxu1 %v1419_v55  ;;  %v1421_v43 = vmax.f32 %v1387_v3, 0.0 }
 0x3cc   :  { %1710 = vmatprep.mubr.f32.mxu1 %v4580_v61 }
 0x3cd   :  { %v1420_v24 = vmax.f32 %v1382_v13, 0.0 }
 0x3cf   :  { %1711 = vmatmul.mubr.f32.gmra.mxu1 %v1420_v24 }
 0x3d0   :  { %1716 = vmatprep.mubr.f32.mxu1 %v4580_v61 }
 0x3d3   :  { %1717 = vmatmul.mubr.f32.gmra.mxu1 %v1421_v43 }
 0x3d5   :  { %v2139_v46 = vpop.xlane.xlu0 %2138 }
 0x3d6   :  { %v2140_v21 = vrot.slane %v2139_v46, 4 }
 0x3d8   :  { %v2141_v20 = vadd.f32 %v2140_v21, %v2139_v46 }
 0x3da   :  { %v2142_v59 = vrot.slane %v2141_v20, 2 }
 0x3dc   :  { %v2143_v35 = vadd.f32 %v2142_v59, %v2141_v20  ;;  %v2682_v20 = vld [vmem:[%s4541_s0 + $0x48] sm:$0xff] }
 0x3de   :  { %v1532_v58 = vpop.f32.mrf.mxu1  ;;  %v2144_v61 = vrot.slane %v2143_v35, 1 }
 0x3df   :  { %v1533_v14 = vadd.f32 %v1532_v58, %v4278_v62 }
 0x3e0   :  { %v1534_v50 = vpop.f32.mrf.mxu1  ;;  %v2145_v11 = vadd.f32 %v2144_v61, %v2143_v35  ;;  %v2683_v61 = vld [vmem:[%s4541_s0 + $0x50] sm:$0xff] }
 0x3e1   :  { %v1723_v51 = vsub.f32 %v2673_v31, %v1533_v14  ;;  %v1535_v42 = vadd.f32 %v1534_v50, %v4280_v56 }
 0x3e2   :  { %v1538_v30 = vpop.f32.mrf.mxu1  ;;  %2581 = vpush %v2145_v11 }
 0x3e3   :  { %v1724_v53 = vsub.f32 %v2674_v19, %v1535_v42  ;;  %v1539_v37 = vadd.f32 %v1538_v30, %v4278_v62  ;;  %v2147_v36 = vmul.f32 %v1723_v51, %v1723_v51  ;;  %v2684_v42 = vld [vmem:[%s4541_s0 + $0x58] sm:$0xff] }
 0x3e4   :  { %v1540_v54 = vpop.f32.mrf.mxu1 }
 0x3e5   :  { %v2148_v40 = vmul.f32 %v1724_v53, %v1724_v53  ;;  %v1725_v4 = vsub.f32 %v2675_v57, %v1539_v37  ;;  %v1541_v45 = vadd.f32 %v1540_v54, %v4280_v56 }
 0x3e6   :  { %v1544_v8 = vpop.f32.mrf.mxu1 }
 0x3e7   :  { %v2211_v39 = vadd.f32 %v2148_v40, %v2147_v36  ;;  %v2149_v41 = vmul.f32 %v1725_v4, %v1725_v4  ;;  %v1726_v1 = vsub.f32 %v2676_v26, %v1541_v45  ;;  %v1545_v28 = vadd.f32 %v1544_v8, %v4278_v62  ;;  %v2685_v36 = vld [vmem:[%s4541_s0 + $0x60] sm:$0xff] }
 0x3e8   :  { %v1546_v0 = vpop.f32.mrf.mxu1 }
 0x3e9   :  { %v2212_v10 = vadd.f32 %v2211_v39, %v2149_v41  ;;  %v2150_v44 = vmul.f32 %v1726_v1, %v1726_v1  ;;  %v1727_v15 = vsub.f32 %v2677_v48, %v1545_v28  ;;  %v1547_v63 = vadd.f32 %v1546_v0, %v4280_v56  ;;  %v2686_v39 = vld [vmem:[%s4541_s0 + $0x68] sm:$0xff] }
 0x3ea   :  { %v1550_v7 = vpop.f32.mrf.mxu1 }
 0x3eb   :  { %v2213_v60 = vadd.f32 %v2212_v10, %v2150_v44  ;;  %v2151_v16 = vmul.f32 %v1727_v15, %v1727_v15  ;;  %v1728_v49 = vsub.f32 %v2678_v25, %v1547_v63  ;;  %v1551_v17 = vadd.f32 %v1550_v7, %v4278_v62  ;;  %v2687_v10 = vld [vmem:[%s4541_s0 + $0x70] sm:$0xff] }
 0x3ec   :  { %v1552_v9 = vpop.f32.mrf.mxu1 }
 0x3ed   :  { %v2214_v33 = vadd.f32 %v2213_v60, %v2151_v16  ;;  %v2152_v12 = vmul.f32 %v1728_v49, %v1728_v49  ;;  %v1729_v2 = vsub.f32 %v2679_v18, %v1551_v17  ;;  %v1553_v29 = vadd.f32 %v1552_v9, %v4280_v56  ;;  %v2688_v60 = vld [vmem:[%s4541_s0 + $0x78] sm:$0xff] }
 0x3ee   :  { %v1556_v5 = vpop.f32.mrf.mxu1 }
 0x3ef   :  { %v2215_v22 = vadd.f32 %v2214_v33, %v2152_v12  ;;  %v2153_v38 = vmul.f32 %v1729_v2, %v1729_v2  ;;  %v1730_v55 = vsub.f32 %v2680_v6, %v1553_v29  ;;  %v1557_v27 = vadd.f32 %v1556_v5, %v4278_v62  ;;  %v2689_v33 = vld [vmem:[%s4541_s0 + $0x80] sm:$0xff] }
 0x3f0   :  { %v1558_v13 = vpop.f32.mrf.mxu1 }
 0x3f1   :  { %v2216_v3 = vadd.f32 %v2215_v22, %v2153_v38  ;;  %v2154_v24 = vmul.f32 %v1730_v55, %v1730_v55  ;;  %v1731_v43 = vsub.f32 %v2681_v47, %v1557_v27  ;;  %v1559_v23 = vadd.f32 %v1558_v13, %v4280_v56  ;;  %v2690_v22 = vld [vmem:[%s4541_s0 + $0x88] sm:$0xff] }
 0x3f2   :  { %v1562_v46 = vpop.f32.mrf.mxu1 }
 0x3f3   :  { %v2217_v21 = vadd.f32 %v2216_v3, %v2154_v24  ;;  %v2155_v32 = vmul.f32 %v1731_v43, %v1731_v43  ;;  %v1732_v52 = vsub.f32 %v2682_v20, %v1559_v23  ;;  %v1563_v34 = vadd.f32 %v1562_v46, %v4278_v62  ;;  %v2691_v3 = vld [vmem:[%s4541_s0 + $0x90] sm:$0xff] }
 0x3f4   :  { %v1564_v59 = vpop.f32.mrf.mxu1 }
 0x3f5   :  { %v2218_v35 = vadd.f32 %v2217_v21, %v2155_v32  ;;  %v2156_v58 = vmul.f32 %v1732_v52, %v1732_v52  ;;  %v1733_v14 = vsub.f32 %v2683_v61, %v1563_v34  ;;  %v1565_v50 = vadd.f32 %v1564_v59, %v4280_v56  ;;  %v2692_v21 = vld [vmem:[%s4541_s0 + $0x98] sm:$0xff] }
 0x3f6   :  { %v1568_v11 = vpop.f32.mrf.mxu1 }
 0x3f7   :  { %v2219_v31 = vadd.f32 %v2218_v35, %v2156_v58  ;;  %v2157_v51 = vmul.f32 %v1733_v14, %v1733_v14  ;;  %v1734_v30 = vsub.f32 %v2684_v42, %v1565_v50  ;;  %v1569_v19 = vadd.f32 %v1568_v11, %v4278_v62  ;;  %v2693_v35 = vld [vmem:[%s4541_s0 + $0xa0] sm:$0xff] }
 0x3f8   :  { %v1570_v53 = vpop.f32.mrf.mxu1 }
 0x3f9   :  { %v2220_v37 = vadd.f32 %v2219_v31, %v2157_v51  ;;  %v2158_v54 = vmul.f32 %v1734_v30, %v1734_v30  ;;  %v1735_v40 = vsub.f32 %v2685_v36, %v1569_v19  ;;  %v1571_v57 = vadd.f32 %v1570_v53, %v4280_v56  ;;  %v2694_v31 = vld [vmem:[%s4541_s0 + $0xa8] sm:$0xff] }
 0x3fa   :  { %v1574_v4 = vpop.f32.mrf.mxu1 }
 0x3fb   :  { %v2221_v45 = vadd.f32 %v2220_v37, %v2158_v54  ;;  %v2159_v8 = vmul.f32 %v1735_v40, %v1735_v40  ;;  %v1736_v41 = vsub.f32 %v2686_v39, %v1571_v57  ;;  %v1575_v26 = vadd.f32 %v1574_v4, %v4278_v62  ;;  %v2695_v37 = vld [vmem:[%s4541_s0 + $0xb0] sm:$0xff] }
 0x3fc   :  { %v1576_v1 = vpop.f32.mrf.mxu1 }
 0x3fd   :  { %v2222_v28 = vadd.f32 %v2221_v45, %v2159_v8  ;;  %v2160_v0 = vmul.f32 %v1736_v41, %v1736_v41  ;;  %v1737_v44 = vsub.f32 %v2687_v10, %v1575_v26  ;;  %v1577_v48 = vadd.f32 %v1576_v1, %v4280_v56  ;;  %v2696_v45 = vld [vmem:[%s4541_s0 + $0xb8] sm:$0xff] }
 0x3fe   :  { %v1580_v15 = vpop.f32.mrf.mxu1 }
 0x3ff   :  { %v2223_v63 = vadd.f32 %v2222_v28, %v2160_v0  ;;  %v2161_v7 = vmul.f32 %v1737_v44, %v1737_v44  ;;  %v1738_v16 = vsub.f32 %v2688_v60, %v1577_v48  ;;  %v1581_v25 = vadd.f32 %v1580_v15, %v4278_v62  ;;  %v2697_v28 = vld [vmem:[%s4541_s0 + $0xc0] sm:$0xff] }
 0x400   :  { %v1582_v49 = vpop.f32.mrf.mxu1 }
 0x401   :  { %v2224_v17 = vadd.f32 %v2223_v63, %v2161_v7  ;;  %v2162_v9 = vmul.f32 %v1738_v16, %v1738_v16  ;;  %v1739_v12 = vsub.f32 %v2689_v33, %v1581_v25  ;;  %v1583_v18 = vadd.f32 %v1582_v49, %v4280_v56  ;;  %v2698_v63 = vld [vmem:[%s4541_s0 + $0xc8] sm:$0xff] }
 0x402   :  { %v1586_v2 = vpop.f32.mrf.mxu1 }
 0x403   :  { %v2225_v29 = vadd.f32 %v2224_v17, %v2162_v9  ;;  %v2163_v5 = vmul.f32 %v1739_v12, %v1739_v12  ;;  %v1740_v38 = vsub.f32 %v2690_v22, %v1583_v18  ;;  %v1587_v6 = vadd.f32 %v1586_v2, %v4278_v62  ;;  %v2699_v17 = vld [vmem:[%s4541_s0 + $0xd0] sm:$0xff] }
 0x404   :  { %v1588_v55 = vpop.f32.mrf.mxu1 }
 0x405   :  { %v2226_v27 = vadd.f32 %v2225_v29, %v2163_v5  ;;  %v2164_v13 = vmul.f32 %v1740_v38, %v1740_v38  ;;  %v1741_v24 = vsub.f32 %v2691_v3, %v1587_v6  ;;  %v1589_v47 = vadd.f32 %v1588_v55, %v4280_v56  ;;  %v2700_v29 = vld [vmem:[%s4541_s0 + $0xd8] sm:$0xff] }
 0x406   :  { %v1592_v43 = vpop.f32.mrf.mxu1 }
 0x407   :  { %v2227_v23 = vadd.f32 %v2226_v27, %v2164_v13  ;;  %v2165_v46 = vmul.f32 %v1741_v24, %v1741_v24  ;;  %v1742_v32 = vsub.f32 %v2692_v21, %v1589_v47  ;;  %v1593_v20 = vadd.f32 %v1592_v43, %v4278_v62  ;;  %v2701_v27 = vld [vmem:[%s4541_s0 + $0xe0] sm:$0xff] }
 0x408   :  { %v1594_v52 = vpop.f32.mrf.mxu1 }
 0x409   :  { %v2228_v34 = vadd.f32 %v2227_v23, %v2165_v46  ;;  %v2166_v59 = vmul.f32 %v1742_v32, %v1742_v32  ;;  %v1743_v58 = vsub.f32 %v2693_v35, %v1593_v20  ;;  %v1595_v61 = vadd.f32 %v1594_v52, %v4280_v56  ;;  %v2702_v23 = vld [vmem:[%s4541_s0 + $0xe8] sm:$0xff] }
 0x40a   :  { %v1598_v14 = vpop.f32.mrf.mxu1 }
 0x40b   :  { %v2229_v50 = vadd.f32 %v2228_v34, %v2166_v59  ;;  %v2167_v11 = vmul.f32 %v1743_v58, %v1743_v58  ;;  %v1744_v51 = vsub.f32 %v2694_v31, %v1595_v61  ;;  %v1599_v42 = vadd.f32 %v1598_v14, %v4278_v62  ;;  %v2703_v34 = vld [vmem:[%s4541_s0 + $0xf0] sm:$0xff]  ;;  %v2704_v14 = vld [vmem:[%s4541_s0 + $0xf8] sm:$0xff] }
 0x40c   :  { %v1600_v30 = vpop.f32.mrf.mxu1 }
 0x40d   :  { %v2230_v19 = vadd.f32 %v2229_v50, %v2167_v11  ;;  %v2168_v53 = vmul.f32 %v1744_v51, %v1744_v51  ;;  %v1745_v54 = vsub.f32 %v2695_v37, %v1599_v42  ;;  %v1601_v36 = vadd.f32 %v1600_v30, %v4280_v56 }
 0x40e   :  { %v1604_v40 = vpop.f32.mrf.mxu1 }
 0x40f   :  { %v2231_v57 = vadd.f32 %v2230_v19, %v2168_v53  ;;  %v2169_v4 = vmul.f32 %v1745_v54, %v1745_v54  ;;  %v1746_v8 = vsub.f32 %v2696_v45, %v1601_v36  ;;  %v1605_v39 = vadd.f32 %v1604_v40, %v4278_v62  ;;  %v2705_v19 = vld [vmem:[%s4541_s0 + $0x100] sm:$0xff] }
 0x410   :  { %v1606_v41 = vpop.f32.mrf.mxu1 }
 0x411   :  { %v2232_v26 = vadd.f32 %v2231_v57, %v2169_v4  ;;  %v2170_v1 = vmul.f32 %v1746_v8, %v1746_v8  ;;  %v1747_v0 = vsub.f32 %v2697_v28, %v1605_v39  ;;  %v1607_v10 = vadd.f32 %v1606_v41, %v4280_v56  ;;  %v2706_v57 = vld [vmem:[%s4541_s0 + $0x108] sm:$0xff] }
 0x412   :  { %v1610_v44 = vpop.f32.mrf.mxu1 }
 0x413   :  { %v2233_v48 = vadd.f32 %v2232_v26, %v2170_v1  ;;  %v2171_v15 = vmul.f32 %v1747_v0, %v1747_v0  ;;  %v1748_v7 = vsub.f32 %v2698_v63, %v1607_v10  ;;  %v1611_v60 = vadd.f32 %v1610_v44, %v4278_v62  ;;  %v2707_v26 = vld [vmem:[%s4541_s0 + $0x110] sm:$0xff]  ;;  %s2582_s24 = spop %2581 }
 0x414   :  { %v1612_v16 = vpop.f32.mrf.mxu1 }
 0x415   :  { %v2234_v25 = vadd.f32 %v2233_v48, %v2171_v15  ;;  %v2172_v49 = vmul.f32 %v1748_v7, %v1748_v7  ;;  %v1749_v9 = vsub.f32 %v2699_v17, %v1611_v60  ;;  %v1613_v33 = vadd.f32 %v1612_v16, %v4280_v56  ;;  %v2708_v48 = vld [vmem:[%s4541_s0 + $0x118] sm:$0xff] }
 0x416   :  { %v1616_v12 = vpop.f32.mrf.mxu1 }
 0x417   :  { %v2235_v18 = vadd.f32 %v2234_v25, %v2172_v49  ;;  %v2173_v2 = vmul.f32 %v1749_v9, %v1749_v9  ;;  %v1750_v5 = vsub.f32 %v2700_v29, %v1613_v33  ;;  %v1617_v22 = vadd.f32 %v1616_v12, %v4278_v62  ;;  %v2709_v25 = vld [vmem:[%s4541_s0 + $0x120] sm:$0xff] }
 0x418   :  { %v1618_v38 = vpop.f32.mrf.mxu1 }
 0x419   :  { %v2236_v6 = vadd.f32 %v2235_v18, %v2173_v2  ;;  %v2174_v55 = vmul.f32 %v1750_v5, %v1750_v5  ;;  %v1751_v13 = vsub.f32 %v2701_v27, %v1617_v22  ;;  %v1619_v3 = vadd.f32 %v1618_v38, %v4280_v56  ;;  %v2710_v18 = vld [vmem:[%s4541_s0 + $0x128] sm:$0xff] }
 0x41a   :  { %v1622_v24 = vpop.f32.mrf.mxu1 }
 0x41b   :  { %v2237_v47 = vadd.f32 %v2236_v6, %v2174_v55  ;;  %v2175_v43 = vmul.f32 %v1751_v13, %v1751_v13  ;;  %v1752_v46 = vsub.f32 %v2702_v23, %v1619_v3  ;;  %v1623_v21 = vadd.f32 %v1622_v24, %v4278_v62  ;;  %v2711_v6 = vld [vmem:[%s4541_s0 + $0x130] sm:$0xff] }
 0x41c   :  { %v1624_v32 = vpop.f32.mrf.mxu1 }
 0x41d   :  { %v2238_v20 = vadd.f32 %v2237_v47, %v2175_v43  ;;  %v2176_v52 = vmul.f32 %v1752_v46, %v1752_v46  ;;  %v1753_v59 = vsub.f32 %v2703_v34, %v1623_v21  ;;  %v1625_v35 = vadd.f32 %v1624_v32, %v4280_v56  ;;  %v2712_v47 = vld [vmem:[%s4541_s0 + $0x138] sm:$0xff] }
 0x41f   :  { %v2239_v58 = vadd.f32 %v2238_v20, %v2176_v52  ;;  %v2177_v61 = vmul.f32 %v1753_v59, %v1753_v59  ;;  %v1754_v50 = vsub.f32 %v2704_v14, %v1625_v35  ;;  %v2713_v20 = vld [vmem:[%s4541_s0 + $0x140] sm:$0xff] }
 0x421   :  { %v2240_v31 = vadd.f32 %v2239_v58, %v2177_v61  ;;  %v2178_v51 = vmul.f32 %v1754_v50, %v1754_v50  ;;  %v2714_v61 = vld [vmem:[%s4541_s0 + $0x148] sm:$0xff] }
 0x423   :  { %v2241_v36 = vadd.f32 %v2240_v31, %v2178_v51 }
 0x457   :  { %v1628_v11 = vpop.f32.mrf.mxu1 }
 0x458   :  { %v1629_v42 = vadd.f32 %v1628_v11, %v4278_v62 }
 0x459   :  { %v1630_v30 = vpop.f32.mrf.mxu1 }
 0x45a   :  { %v1755_v53 = vsub.f32 %v2705_v19, %v1629_v42  ;;  %v1631_v37 = vadd.f32 %v1630_v30, %v4280_v56  ;;  %v2715_v42 = vld [vmem:[%s4541_s0 + $0x150] sm:$0xff] }
 0x45b   :  { %v1634_v54 = vpop.f32.mrf.mxu1 }
 0x45c   :  { %v2179_v40 = vmul.f32 %v1755_v53, %v1755_v53  ;;  %v1756_v4 = vsub.f32 %v2706_v57, %v1631_v37  ;;  %v1635_v45 = vadd.f32 %v1634_v54, %v4278_v62 }
 0x45d   :  { %v1636_v8 = vpop.f32.mrf.mxu1 }
 0x45e   :  { %v2242_v39 = vadd.f32 %v2241_v36, %v2179_v40  ;;  %v2180_v41 = vmul.f32 %v1756_v4, %v1756_v4  ;;  %v1757_v1 = vsub.f32 %v2707_v26, %v1635_v45  ;;  %v1637_v28 = vadd.f32 %v1636_v8, %v4280_v56  ;;  %v2716_v36 = vld [vmem:[%s4541_s0 + $0x158] sm:$0xff] }
 0x45f   :  { %v1640_v0 = vpop.f32.mrf.mxu1 }
 0x460   :  { %v2243_v10 = vadd.f32 %v2242_v39, %v2180_v41  ;;  %v2181_v44 = vmul.f32 %v1757_v1, %v1757_v1  ;;  %v1758_v15 = vsub.f32 %v2708_v48, %v1637_v28  ;;  %v1641_v63 = vadd.f32 %v1640_v0, %v4278_v62  ;;  %v2717_v39 = vld [vmem:[%s4541_s0 + $0x160] sm:$0xff] }
 0x461   :  { %v1642_v7 = vpop.f32.mrf.mxu1 }
 0x462   :  { %v2244_v60 = vadd.f32 %v2243_v10, %v2181_v44  ;;  %v2182_v16 = vmul.f32 %v1758_v15, %v1758_v15  ;;  %v1759_v49 = vsub.f32 %v2709_v25, %v1641_v63  ;;  %v1643_v17 = vadd.f32 %v1642_v7, %v4280_v56  ;;  %v2718_v10 = vld [vmem:[%s4541_s0 + $0x168] sm:$0xff] }
 0x463   :  { %v1646_v9 = vpop.f32.mrf.mxu1 }
 0x464   :  { %v2245_v33 = vadd.f32 %v2244_v60, %v2182_v16  ;;  %v2183_v12 = vmul.f32 %v1759_v49, %v1759_v49  ;;  %v1760_v2 = vsub.f32 %v2710_v18, %v1643_v17  ;;  %v1647_v29 = vadd.f32 %v1646_v9, %v4278_v62  ;;  %v2719_v60 = vld [vmem:[%s4541_s0 + $0x170] sm:$0xff] }
 0x465   :  { %v1648_v5 = vpop.f32.mrf.mxu1 }
 0x466   :  { %v2246_v22 = vadd.f32 %v2245_v33, %v2183_v12  ;;  %v2184_v38 = vmul.f32 %v1760_v2, %v1760_v2  ;;  %v1761_v55 = vsub.f32 %v2711_v6, %v1647_v29  ;;  %v1649_v27 = vadd.f32 %v1648_v5, %v4280_v56  ;;  %v2720_v33 = vld [vmem:[%s4541_s0 + $0x178] sm:$0xff] }
 0x467   :  { %v1652_v13 = vpop.f32.mrf.mxu1 }
 0x468   :  { %v2247_v3 = vadd.f32 %v2246_v22, %v2184_v38  ;;  %v2185_v24 = vmul.f32 %v1761_v55, %v1761_v55  ;;  %v1762_v43 = vsub.f32 %v2712_v47, %v1649_v27  ;;  %v1653_v23 = vadd.f32 %v1652_v13, %v4278_v62  ;;  %v2721_v22 = vld [vmem:[%s4541_s0 + $0x180] sm:$0xff] }
 0x469   :  { %v1654_v46 = vpop.f32.mrf.mxu1 }
 0x46a   :  { %v2248_v21 = vadd.f32 %v2247_v3, %v2185_v24  ;;  %v2186_v32 = vmul.f32 %v1762_v43, %v1762_v43  ;;  %v1763_v52 = vsub.f32 %v2713_v20, %v1653_v23  ;;  %v1655_v34 = vadd.f32 %v1654_v46, %v4280_v56  ;;  %v2722_v3 = vld [vmem:[%s4541_s0 + $0x188] sm:$0xff] }
 0x46b   :  { %v1658_v59 = vpop.f32.mrf.mxu1 }
 0x46c   :  { %v2249_v35 = vadd.f32 %v2248_v21, %v2186_v32  ;;  %v2187_v58 = vmul.f32 %v1763_v52, %v1763_v52  ;;  %v1764_v14 = vsub.f32 %v2714_v61, %v1655_v34  ;;  %v1659_v50 = vadd.f32 %v1658_v59, %v4278_v62  ;;  %v2723_v21 = vld [vmem:[%s4541_s0 + $0x190] sm:$0xff] }
 0x46d   :  { %v1660_v11 = vpop.f32.mrf.mxu1 }
 0x46e   :  { %v2250_v31 = vadd.f32 %v2249_v35, %v2187_v58  ;;  %v2188_v51 = vmul.f32 %v1764_v14, %v1764_v14  ;;  %v1765_v30 = vsub.f32 %v2715_v42, %v1659_v50  ;;  %v1661_v19 = vadd.f32 %v1660_v11, %v4280_v56  ;;  %v2724_v35 = vld [vmem:[%s4541_s0 + $0x198] sm:$0xff] }
 0x46f   :  { %v1664_v53 = vpop.f32.mrf.mxu1 }
 0x470   :  { %v2251_v37 = vadd.f32 %v2250_v31, %v2188_v51  ;;  %v2189_v54 = vmul.f32 %v1765_v30, %v1765_v30  ;;  %v1766_v40 = vsub.f32 %v2716_v36, %v1661_v19  ;;  %v1665_v57 = vadd.f32 %v1664_v53, %v4278_v62  ;;  %v2725_v31 = vld [vmem:[%s4541_s0 + $0x1a0] sm:$0xff] }
 0x471   :  { %v1666_v4 = vpop.f32.mrf.mxu1 }
 0x472   :  { %v2252_v45 = vadd.f32 %v2251_v37, %v2189_v54  ;;  %v2190_v8 = vmul.f32 %v1766_v40, %v1766_v40  ;;  %v1767_v41 = vsub.f32 %v2717_v39, %v1665_v57  ;;  %v1667_v26 = vadd.f32 %v1666_v4, %v4280_v56  ;;  %v2726_v37 = vld [vmem:[%s4541_s0 + $0x1a8] sm:$0xff] }
 0x473   :  { %v1670_v1 = vpop.f32.mrf.mxu1 }
 0x474   :  { %v2253_v28 = vadd.f32 %v2252_v45, %v2190_v8  ;;  %v2191_v0 = vmul.f32 %v1767_v41, %v1767_v41  ;;  %v1768_v44 = vsub.f32 %v2718_v10, %v1667_v26  ;;  %v1671_v48 = vadd.f32 %v1670_v1, %v4278_v62  ;;  %v2727_v45 = vld [vmem:[%s4541_s0 + $0x1b0] sm:$0xff] }
 0x475   :  { %v1672_v15 = vpop.f32.mrf.mxu1 }
 0x476   :  { %v2254_v63 = vadd.f32 %v2253_v28, %v2191_v0  ;;  %v2192_v7 = vmul.f32 %v1768_v44, %v1768_v44  ;;  %v1769_v16 = vsub.f32 %v2719_v60, %v1671_v48  ;;  %v1673_v25 = vadd.f32 %v1672_v15, %v4280_v56  ;;  %v2728_v28 = vld [vmem:[%s4541_s0 + $0x1b8] sm:$0xff] }
 0x477   :  { %v1676_v49 = vpop.f32.mrf.mxu1 }
 0x478   :  { %v2255_v17 = vadd.f32 %v2254_v63, %v2192_v7  ;;  %v2193_v9 = vmul.f32 %v1769_v16, %v1769_v16  ;;  %v1770_v12 = vsub.f32 %v2720_v33, %v1673_v25  ;;  %v1677_v18 = vadd.f32 %v1676_v49, %v4278_v62  ;;  %v2729_v63 = vld [vmem:[%s4541_s0 + $0x1c0] sm:$0xff] }
 0x479   :  { %v1678_v2 = vpop.f32.mrf.mxu1 }
 0x47a   :  { %v2256_v29 = vadd.f32 %v2255_v17, %v2193_v9  ;;  %v2194_v5 = vmul.f32 %v1770_v12, %v1770_v12  ;;  %v1771_v38 = vsub.f32 %v2721_v22, %v1677_v18  ;;  %v1679_v6 = vadd.f32 %v1678_v2, %v4280_v56  ;;  %v2730_v17 = vld [vmem:[%s4541_s0 + $0x1c8] sm:$0xff] }
 0x47b   :  { %v1682_v55 = vpop.f32.mrf.mxu1 }
 0x47c   :  { %v2257_v27 = vadd.f32 %v2256_v29, %v2194_v5  ;;  %v2195_v13 = vmul.f32 %v1771_v38, %v1771_v38  ;;  %v1772_v24 = vsub.f32 %v2722_v3, %v1679_v6  ;;  %v1683_v47 = vadd.f32 %v1682_v55, %v4278_v62  ;;  %v2731_v29 = vld [vmem:[%s4541_s0 + $0x1d0] sm:$0xff] }
 0x47d   :  { %v1684_v43 = vpop.f32.mrf.mxu1 }
 0x47e   :  { %v2258_v23 = vadd.f32 %v2257_v27, %v2195_v13  ;;  %v2196_v46 = vmul.f32 %v1772_v24, %v1772_v24  ;;  %v1773_v32 = vsub.f32 %v2723_v21, %v1683_v47  ;;  %v1685_v20 = vadd.f32 %v1684_v43, %v4280_v56  ;;  %v2732_v27 = vld [vmem:[%s4541_s0 + $0x1d8] sm:$0xff] }
 0x47f   :  { %v1688_v52 = vpop.f32.mrf.mxu1 }
 0x480   :  { %v2259_v34 = vadd.f32 %v2258_v23, %v2196_v46  ;;  %v2197_v59 = vmul.f32 %v1773_v32, %v1773_v32  ;;  %v1774_v58 = vsub.f32 %v2724_v35, %v1685_v20  ;;  %v1689_v61 = vadd.f32 %v1688_v52, %v4278_v62  ;;  %v2733_v23 = vld [vmem:[%s4541_s0 + $0x1e0] sm:$0xff] }
 0x481   :  { %v1690_v14 = vpop.f32.mrf.mxu1 }
 0x482   :  { %v2260_v50 = vadd.f32 %v2259_v34, %v2197_v59  ;;  %v2198_v11 = vmul.f32 %v1774_v58, %v1774_v58  ;;  %v1775_v51 = vsub.f32 %v2725_v31, %v1689_v61  ;;  %v1691_v42 = vadd.f32 %v1690_v14, %v4280_v56  ;;  %v2734_v34 = vld [vmem:[%s4541_s0 + $0x1e8] sm:$0xff] }
 0x483   :  { %v1694_v30 = vpop.f32.mrf.mxu1 }
 0x484   :  { %v2261_v19 = vadd.f32 %v2260_v50, %v2198_v11  ;;  %v2199_v53 = vmul.f32 %v1775_v51, %v1775_v51  ;;  %v1776_v54 = vsub.f32 %v2726_v37, %v1691_v42  ;;  %v1695_v36 = vadd.f32 %v1694_v30, %v4278_v62  ;;  %v2735_v50 = vld [vmem:[%s4541_s0 + $0x1f0] sm:$0xff]  ;;  %v2736_v30 = vld [vmem:[%s4541_s0 + $0x1f8] sm:$0xff]  ;;  %s2750_s0 = smov [#allocation2]  }
 0x485   :  { %v1696_v40 = vpop.f32.mrf.mxu1 }
 0x486   :  { %v2262_v57 = vadd.f32 %v2261_v19, %v2199_v53  ;;  %v2200_v4 = vmul.f32 %v1776_v54, %v1776_v54  ;;  %v1777_v8 = vsub.f32 %v2727_v45, %v1695_v36  ;;  %v1697_v39 = vadd.f32 %v1696_v40, %v4280_v56 }
 0x487   :  { %v1700_v41 = vpop.f32.mrf.mxu1 }
 0x488   :  { %v2263_v26 = vadd.f32 %v2262_v57, %v2200_v4  ;;  %v2201_v1 = vmul.f32 %v1777_v8, %v1777_v8  ;;  %v1778_v0 = vsub.f32 %v2728_v28, %v1697_v39  ;;  %v1701_v10 = vadd.f32 %v1700_v41, %v4278_v62 }
 0x489   :  { %v1702_v44 = vpop.f32.mrf.mxu1 }
 0x48a   :  { %v2264_v48 = vadd.f32 %v2263_v26, %v2201_v1  ;;  %v2202_v15 = vmul.f32 %v1778_v0, %v1778_v0  ;;  %v1779_v7 = vsub.f32 %v2729_v63, %v1701_v10  ;;  %v1703_v60 = vadd.f32 %v1702_v44, %v4280_v56 }
 0x48b   :  { %v1706_v16 = vpop.f32.mrf.mxu1 }
 0x48c   :  { %v2265_v25 = vadd.f32 %v2264_v48, %v2202_v15  ;;  %v2203_v49 = vmul.f32 %v1779_v7, %v1779_v7  ;;  %v1780_v9 = vsub.f32 %v2730_v17, %v1703_v60  ;;  %v1707_v33 = vadd.f32 %v1706_v16, %v4278_v62 }
 0x48d   :  { %v1708_v12 = vpop.f32.mrf.mxu1 }
 0x48e   :  { %v2266_v18 = vadd.f32 %v2265_v25, %v2203_v49  ;;  %v2204_v2 = vmul.f32 %v1780_v9, %v1780_v9  ;;  %v1781_v5 = vsub.f32 %v2731_v29, %v1707_v33  ;;  %v1709_v22 = vadd.f32 %v1708_v12, %v4280_v56 }
 0x48f   :  { %v1712_v38 = vpop.f32.mrf.mxu1 }
 0x490   :  { %v2267_v6 = vadd.f32 %v2266_v18, %v2204_v2  ;;  %v2205_v55 = vmul.f32 %v1781_v5, %v1781_v5  ;;  %v1782_v13 = vsub.f32 %v2732_v27, %v1709_v22  ;;  %v1713_v3 = vadd.f32 %v1712_v38, %v4278_v62 }
 0x491   :  { %v1714_v24 = vpop.f32.mrf.mxu1 }
 0x492   :  { %v2268_v47 = vadd.f32 %v2267_v6, %v2205_v55  ;;  %v2206_v43 = vmul.f32 %v1782_v13, %v1782_v13  ;;  %v1783_v46 = vsub.f32 %v2733_v23, %v1713_v3  ;;  %v1715_v21 = vadd.f32 %v1714_v24, %v4280_v56 }
 0x493   :  { %v1718_v32 = vpop.f32.mrf.mxu1 }
 0x494   :  { %v2269_v20 = vadd.f32 %v2268_v47, %v2206_v43  ;;  %v2207_v52 = vmul.f32 %v1783_v46, %v1783_v46  ;;  %v1784_v59 = vsub.f32 %v2734_v34, %v1715_v21  ;;  %v1719_v35 = vadd.f32 %v1718_v32, %v4278_v62 }
 0x495   :  { %v1720_v58 = vpop.f32.mrf.mxu1 }
 0x496   :  { %v2270_v61 = vadd.f32 %v2269_v20, %v2207_v52  ;;  %v2208_v14 = vmul.f32 %v1784_v59, %v1784_v59  ;;  %v1785_v11 = vsub.f32 %v2735_v50, %v1719_v35  ;;  %v1721_v31 = vadd.f32 %v1720_v58, %v4280_v56 }
 0x498   :  { %v2271_v51 = vadd.f32 %v2270_v61, %v2208_v14  ;;  %v2209_v42 = vmul.f32 %v1785_v11, %v1785_v11  ;;  %v1786_v19 = vsub.f32 %v2736_v30, %v1721_v31 }
 0x49a   :  { %v2210_v53 = vmul.f32 %v1786_v19, %v1786_v19  ;;  %v2272_v37 = vadd.f32 %v2271_v51, %v2209_v42 }
 0x49c   :  { %v2273_v62 = vadd.f32 %v2272_v37, %v2210_v53 }
 0x49e   :  { %2274 = vadd.xlane.f32.xlu1 %v2273_v62 }
 0x527   :  { %v2275_v54 = vpop.xlane.xlu1 %2274 }
 0x528   :  { %v2276_v36 = vrot.slane %v2275_v54, 4 }
 0x52a   :  { %v2277_v40 = vadd.f32 %v2276_v36, %v2275_v54 }
 0x52c   :  { %v2278_v57 = vrot.slane %v2277_v40, 2 }
 0x52e   :  { %v2279_v4 = vadd.f32 %v2278_v57, %v2277_v40 }
 0x530   :  { %v2280_v45 = vrot.slane %v2279_v4, 1 }
 0x532   :  { %v2281_v8 = vadd.f32 %v2280_v45, %v2279_v4 }
 0x534   :  { %2583 = vpush %v2281_v8 }
 0x565   :  { %s2584_s4 = spop %2583 }
 0x566   :  { %s2283_s25 = smul.f32 -0.5, %s2584_s4 }
 0x568   :  { %s2284_s26 = sadd.f32 %s2582_s24, %s2283_s25 }
 0x56a   :  { %s2337_s27 = sadd.f32 -60223.555, %s2284_s26 }
 0x56c   :  { %s2286_s28 = smul.f32 -0.00390625, %s2337_s27 }
 0x56e   :  { %2288 = sst [smem:[#allocation2]] %s2286_s28 }
 0x56f   :  { %2296 = dma.smem_to_hbm %s2750_s0, 16, %s4551_s10, [#allocation3]  }
 0x570   :  { %2745 = dma.done.wait [#allocation3], 16  }
 0x571   :  { %2746 = vsyncadd [#allocation3], 4294967280 }
 0x572   :  { %2300 = sfence }
 0x573   :  { %2301 = vsyncpa [#allocation3], 1 }

</bundles_post_ra>
